<compile_context>
chip_gen: v7x
topology: tpu7x:2x2x1
jax: 0.10.0
libtpu: 0.0.40
codegen_flags: <defaults>
</compile_context>

<pallas_src>
import math

import jax
import jax.numpy as jnp
from jax import lax
from jax.experimental import pallas as pl
from jax.experimental.pallas import tpu as pltpu

N_LAYERS = 8
PAD_F = 128                 # every layer width (<= 64 here) padded to one MXU tile
_SAVE = {0: 0, 1: 1, 2: 2, 3: 3, 7: 4}   # layer -> slot in the output slab
NEG_MASK = -9e16


def _gae_fused_kernel(x_ref, adj_ref, w_ref, a_ref, out_ref):
    """Entire GAE forward (8 GraphAttention layers), resident in VMEM.

    x_ref   : (N, PAD_F)        f32   input features, zero-padded beyond n_feat
    adj_ref : (N, N)            int8  adjacency mask (nonzero = edge)
    w_ref   : (8, PAD_F, PAD_F) bf16  per-layer W, zero-padded
    a_ref   : (8, 2, PAD_F)     f32   per-layer a; row 0 = a[:f_out], row 1 = a[f_out:]
    out_ref : (5, N, PAD_F)     f32   h1, h2, h3, h4, x_bar (zero-padded columns)
    """
    # Additive connectivity bias: computed ONCE, shared by all 8 layers.
    adj_f = adj_ref[...].astype(jnp.float32)
    bias = jnp.where(adj_f > 0.0, 0.0, NEG_MASK)                    # (N, N)

    h = x_ref[...]                                                  # (N, PAD_F) f32
    for layer in range(N_LAYERS):                                   # unrolled at trace time
        w = w_ref[layer]                                            # (PAD_F, PAD_F) bf16
        a_l = a_ref[layer]                                          # (2, PAD_F) f32
        a_src = a_l[0:1, :]
        a_tgt = a_l[1:2, :]

        # h_l = h @ W : bf16 MXU operands, f32 accumulation.
        hl = jnp.dot(h.astype(jnp.bfloat16), w,
                     preferred_element_type=jnp.float32)            # (N, PAD_F) f32

        # source scores: VPU mul + lane reduce -> natural (N, 1) column.
        src = jnp.sum(hl * a_src, axis=-1, keepdims=True)           # (N, 1)
        # target scores: directly in ROW form via MXU contraction over features
        # (removes the per-layer (N,1)->(1,N) XLU transpose).
        tgt = lax.dot_general(a_tgt, hl, (((1,), (1,)), ((), ())),
                              preferred_element_type=jnp.float32)   # (1, N)

        # e[i, j] = LeakyReLU(src[i] + tgt[j]) + connectivity bias
        e = src + tgt                                               # (N, N)
        e = jnp.maximum(e, 0.2 * e) + bias

        # numerically-stable row softmax (matches torch.softmax(dim=-1))
        e_max = jnp.max(e, axis=-1, keepdims=True)
        p = jnp.exp(e - e_max)
        denom = jnp.sum(p, axis=-1, keepdims=True)
        r = pl.reciprocal(denom, approx=True)                       # EUP vrcp (free slot)
        r = r * (2.0 - denom * r)                                   # one Newton step
        attn = p * r

        # h' = attention @ h_l (bf16 MXU); attention is never stored to HBM.
        h = jnp.dot(attn.astype(jnp.bfloat16), hl.astype(jnp.bfloat16),
                    preferred_element_type=jnp.float32)             # (N, PAD_F) f32

        if layer in _SAVE:
            out_ref[_SAVE[layer]] = h                               # full aligned block store


def gae_forward(params, x, adj):
    """GAE.forward (eval mode: input dropout = identity). Returns (x_bar, h1..h4)."""
    N, n_feat = x.shape
    assert len(params) == N_LAYERS
    assert all(w.shape[0] <= PAD_F and w.shape[1] <= PAD_F for (w, _) in params)

    # ---- pack all per-layer parameters into TWO padded arrays (18 -> 4 input DMAs)
    w_all = jnp.zeros((N_LAYERS, PAD_F, PAD_F), jnp.float32)
    a_all = jnp.zeros((N_LAYERS, 2, PAD_F), jnp.float32)
    for l, (w, a) in enumerate(params):
        f_in, f_out = w.shape
        w_all = w_all.at[l, :f_in, :f_out].set(w)
        a_all = a_all.at[l, :, :f_out].set(a.reshape(2, f_out))
    w_all = w_all.astype(jnp.bfloat16)            # MXU operand dtype; halves weight DMA

    x_pad = jnp.zeros((N, PAD_F), jnp.float32).at[:, :n_feat].set(x)
    adj_mask = (adj > 0).astype(jnp.int8)         # adj is only ever used as a mask

    # advisory cost estimate so XLA schedules surrounding ops around the fused call
    flops = N_LAYERS * (2 * N * PAD_F * PAD_F + 2 * N * N * PAD_F
                        + 4 * N * PAD_F + 8 * N * N)
    transcendentals = N_LAYERS * (N * N + N)
    bytes_accessed = (4 * N * PAD_F + N * N + 2 * N_LAYERS * PAD_F * PAD_F
                      + 4 * N_LAYERS * 2 * PAD_F + 4 * 5 * N * PAD_F)

    vmem = pl.BlockSpec(memory_space=pltpu.MemorySpace.VMEM)
    slab = pl.pallas_call(
        _gae_fused_kernel,
        out_shape=jax.ShapeDtypeStruct((5, N, PAD_F), jnp.float32),
        in_specs=[vmem, vmem, vmem, vmem],
        out_specs=vmem,
        cost_estimate=pl.CostEstimate(flops=flops,
                                      transcendentals=transcendentals,
                                      bytes_accessed=bytes_accessed),
    )(x_pad, adj_mask, w_all, a_all)

    F1 = params[0][0].shape[1]
    F2 = params[1][0].shape[1]
    F3 = params[2][0].shape[1]
    n_z = params[3][0].shape[1]
    h1 = slab[0, :, :F1]
    h2 = slab[1, :, :F2]
    h3 = slab[2, :, :F3]
    h4 = slab[3, :, :n_z]
    x_bar = slab[4, :, :n_feat]
    return x_bar, h1, h2, h3, h4


def _gae_reference(params, x, adj, bf16_matmuls=False):
    """Pure-JAX reference mirroring the PyTorch module (eval mode).

    bf16_matmuls=True mirrors the kernel's MXU dtype choice (bf16 operands,
    f32 accumulation) so the Pallas kernel can be checked to tight tolerance.
    """
    def mm(a, b):
        if bf16_matmuls:
            a, b = a.astype(jnp.bfloat16), b.astype(jnp.bfloat16)
        return jnp.dot(a, b, preferred_element_type=jnp.float32)

    h = x
    hs = []
    for (w, a) in params:
        f_out = w.shape[1]
        hl = mm(h, w)
        src = hl @ a[:f_out, :]
        tgt = hl @ a[f_out:, :]
        e = src + tgt.T
        e = jnp.where(e > 0, e, 0.2 * e)
        e = jnp.where(adj > 0, e, NEG_MASK)
        attn = jax.nn.softmax(e, axis=-1)
        h = mm(attn, hl)
        hs.append(h)
    return hs[7], hs[0], hs[1], hs[2], hs[3]


def _xavier_normal(key, shape):
    fan_in, fan_out = shape[0], shape[1]
    std = math.sqrt(2.0 / (fan_in + fan_out))
    return std * jax.random.normal(key, shape, dtype=jnp.float32)


def init_gae_params(key, n_feat, F1, F2, F3, n_z):
    dims = [(n_feat, F1), (F1, F2), (F2, F3), (F3, n_z),
            (n_z, F3), (F3, F2), (F2, F1), (F1, n_feat)]
    params = []
    for (f_in, f_out) in dims:
        key, kw, ka = jax.random.split(key, 3)
        w = _xavier_normal(kw, (f_in, f_out))
        a = _xavier_normal(ka, (2 * f_out, 1))
        params.append((w, a))
    return params


if __name__ == "__main__":
    # Small shapes: N=32 nodes, n_feat=32, F1=64, F2=32, F3=16, n_z=8
    N, n_feat, F1, F2, F3, n_z = 32, 32, 64, 32, 16, 8

    key = jax.random.PRNGKey(0)
    kx, kadj, kparams = jax.random.split(key, 3)

    x = jax.random.normal(kx, (N, n_feat), dtype=jnp.float32)
    # dense random adjacency, symmetric, with self-loops (rows without any edge
    # would softmax a fully-masked row to uniform, matching the PyTorch behavior)
    adj_rand = (jax.random.uniform(kadj, (N, N)) > 0.5).astype(jnp.float32)
    adj = jnp.maximum(adj_rand, adj_rand.T)
    adj = jnp.maximum(adj, jnp.eye(N, dtype=jnp.float32))

    params = init_gae_params(kparams, n_feat, F1, F2, F3, n_z)

    outs = jax.jit(gae_forward)(params, x, adj)
    outs = jax.block_until_ready(outs)

    x_bar, h1, h2, h3, h4 = outs
    assert x_bar.shape == (N, n_feat)
    assert h1.shape == (N, F1) and h2.shape == (N, F2)
    assert h3.shape == (N, F3) and h4.shape == (N, n_z)
    assert all(bool(jnp.all(jnp.isfinite(o))) for o in outs)

    # (1) tight implementation-equivalence check vs a reference that mirrors the
    #     kernel's bf16 MXU operands (the only intentional numeric difference).
    mirror = _gae_reference(params, x, adj, bf16_matmuls=True)
    for got, want in zip(outs, mirror):
        assert jnp.allclose(got, want, rtol=3e-2, atol=3e-2), \
            float(jnp.max(jnp.abs(got - want)))

    # (2) loose sanity check vs the full-f32 PyTorch-equivalent reference; the gap
    #     is purely bf16 matmul quantization compounding across 8 stacked layers.
    exact = _gae_reference(params, x, adj, bf16_matmuls=False)
    for got, want in zip(outs, exact):
        rel = float(jnp.linalg.norm(got - want) / jnp.linalg.norm(want))
        assert rel < 0.3, rel

    print("KERNEL_OK")
</pallas_src>

<mosaic_0001>
module attributes {stable_mosaic.version = 11 : i64} {
  func.func @_gae_fused_kernel(%arg0: memref<32x128xf32, #tpu.memory_space<vmem>>, %arg1: memref<32x32xi8, #tpu.memory_space<vmem>>, %arg2: memref<8x128x128xbf16, #tpu.memory_space<vmem>>, %arg3: memref<8x2x128xf32, #tpu.memory_space<vmem>>, %arg4: memref<5x32x128xf32, #tpu.memory_space<vmem>>) attributes {dimension_semantics = [], scalar_prefetch = 0 : i64, scratch_operands = 0 : i64, tpu.core_type = #tpu.core_type<tc>} {
    %c0 = arith.constant 0 : index
    %c0_0 = arith.constant 0 : index
    %0 = vector.load %arg1[%c0, %c0_0] : memref<32x32xi8, #tpu.memory_space<vmem>>, vector<32x32xi8>
    %1 = arith.sitofp %0 : vector<32x32xi8> to vector<32x32xf32>
    %cst = arith.constant 0.000000e+00 : f32
    %2 = vector.broadcast %cst : f32 to vector<32x32xf32>
    %3 = arith.cmpf ogt, %1, %2 : vector<32x32xf32>
    %cst_1 = arith.constant 0.000000e+00 : f32
    %cst_2 = arith.constant -9.000000e+16 : f32
    %4 = vector.broadcast %cst_1 : f32 to vector<32x32xf32>
    %5 = vector.broadcast %cst_2 : f32 to vector<32x32xf32>
    %6 = arith.select %3, %4, %5 : vector<32x32xi1>, vector<32x32xf32>
    %c0_3 = arith.constant 0 : index
    %c0_4 = arith.constant 0 : index
    %7 = vector.load %arg0[%c0_3, %c0_4] : memref<32x128xf32, #tpu.memory_space<vmem>>, vector<32x128xf32>
    %c0_5 = arith.constant 0 : index
    %c0_6 = arith.constant 0 : index
    %c0_7 = arith.constant 0 : index
    %8 = vector.load %arg2[%c0_5, %c0_6, %c0_7] : memref<8x128x128xbf16, #tpu.memory_space<vmem>>, vector<1x128x128xbf16>
    %9 = vector.shape_cast %8 : vector<1x128x128xbf16> to vector<128x128xbf16>
    %c0_8 = arith.constant 0 : index
    %c0_9 = arith.constant 0 : index
    %c0_10 = arith.constant 0 : index
    %10 = vector.load %arg3[%c0_8, %c0_9, %c0_10] : memref<8x2x128xf32, #tpu.memory_space<vmem>>, vector<1x2x128xf32>
    %11 = vector.shape_cast %10 : vector<1x2x128xf32> to vector<2x128xf32>
    %12 = vector.extract_strided_slice %11 {offsets = [0, 0], sizes = [1, 128], strides = [1, 1]} : vector<2x128xf32> to vector<1x128xf32>
    %13 = vector.extract_strided_slice %11 {offsets = [1, 0], sizes = [1, 128], strides = [1, 1]} : vector<2x128xf32> to vector<1x128xf32>
    %14 = arith.truncf %7 : vector<32x128xf32> to vector<32x128xbf16>
    %cst_11 = arith.constant dense<0.000000e+00> : vector<32x128xf32>
    %15 = tpu.matmul %14, %9, %cst_11 {dimension_numbers = #tpu.dot_dimension_numbers<[1], [0], [0], [1], [0, 0, 1, 1], [], []>} : vector<32x128xbf16>, vector<128x128xbf16>, vector<32x128xf32> -> vector<32x128xf32>
    %16 = vector.broadcast %12 : vector<1x128xf32> to vector<32x128xf32>
    %17 = arith.mulf %15, %16 : vector<32x128xf32>
    %cst_12 = arith.constant dense<0.000000e+00> : vector<32xf32>
    %18 = vector.multi_reduction <add>, %17, %cst_12 [1] : vector<32x128xf32> to vector<32xf32>
    %19 = vector.shape_cast %18 : vector<32xf32> to vector<32x1xf32>
    %cst_13 = arith.constant dense<0.000000e+00> : vector<1x32xf32>
    %20 = tpu.matmul %13, %15, %cst_13 {dimension_numbers = #tpu.dot_dimension_numbers<[1], [1], [0], [0], [0, 0, 1, 0], [], []>} : vector<1x128xf32>, vector<32x128xf32>, vector<1x32xf32> -> vector<1x32xf32>
    %21 = vector.broadcast %19 : vector<32x1xf32> to vector<32x32xf32>
    %22 = vector.broadcast %20 : vector<1x32xf32> to vector<32x32xf32>
    %23 = arith.addf %21, %22 : vector<32x32xf32>
    %cst_14 = arith.constant 2.000000e-01 : f32
    %24 = vector.broadcast %cst_14 : f32 to vector<32x32xf32>
    %25 = arith.mulf %24, %23 : vector<32x32xf32>
    %26 = arith.maximumf %23, %25 : vector<32x32xf32>
    %27 = arith.addf %26, %6 : vector<32x32xf32>
    %cst_15 = arith.constant dense<0xFF800000> : vector<32xf32>
    %28 = vector.multi_reduction <maximumf>, %27, %cst_15 [1] : vector<32x32xf32> to vector<32xf32>
    %29 = vector.shape_cast %28 : vector<32xf32> to vector<32x1xf32>
    %30 = vector.broadcast %29 : vector<32x1xf32> to vector<32x32xf32>
    %31 = arith.subf %27, %30 : vector<32x32xf32>
    %32 = math.exp %31 : vector<32x32xf32>
    %cst_16 = arith.constant dense<0.000000e+00> : vector<32xf32>
    %33 = vector.multi_reduction <add>, %32, %cst_16 [1] : vector<32x32xf32> to vector<32xf32>
    %34 = vector.shape_cast %33 : vector<32xf32> to vector<32x1xf32>
    %35 = tpu.reciprocal %34 {approx = true} : vector<32x1xf32> -> vector<32x1xf32>
    %36 = arith.mulf %34, %35 : vector<32x1xf32>
    %cst_17 = arith.constant 2.000000e+00 : f32
    %37 = vector.broadcast %cst_17 : f32 to vector<32x1xf32>
    %38 = arith.subf %37, %36 : vector<32x1xf32>
    %39 = arith.mulf %35, %38 : vector<32x1xf32>
    %40 = vector.broadcast %39 : vector<32x1xf32> to vector<32x32xf32>
    %41 = arith.mulf %32, %40 : vector<32x32xf32>
    %42 = arith.truncf %41 : vector<32x32xf32> to vector<32x32xbf16>
    %43 = arith.truncf %15 : vector<32x128xf32> to vector<32x128xbf16>
    %cst_18 = arith.constant dense<0.000000e+00> : vector<32x128xf32>
    %44 = tpu.matmul %42, %43, %cst_18 {dimension_numbers = #tpu.dot_dimension_numbers<[1], [0], [0], [1], [0, 0, 1, 1], [], []>} : vector<32x32xbf16>, vector<32x128xbf16>, vector<32x128xf32> -> vector<32x128xf32>
    %c0_19 = arith.constant 0 : index
    %c0_20 = arith.constant 0 : index
    %c0_21 = arith.constant 0 : index
    %45 = vector.load %arg4[%c0_19, %c0_20, %c0_21] : memref<5x32x128xf32, #tpu.memory_space<vmem>>, vector<1x32x128xf32>
    %46 = vector.shape_cast %45 : vector<1x32x128xf32> to vector<32x128xf32>
    %47 = vector.shape_cast %44 : vector<32x128xf32> to vector<1x32x128xf32>
    tpu.vector_store %arg4[%c0_19, %c0_20, %c0_21], %47 {strides = array<i32>} : memref<5x32x128xf32, #tpu.memory_space<vmem>>, vector<1x32x128xf32>,
    %c1 = arith.constant 1 : index
    %c0_22 = arith.constant 0 : index
    %c0_23 = arith.constant 0 : index
    %48 = vector.load %arg2[%c1, %c0_22, %c0_23] : memref<8x128x128xbf16, #tpu.memory_space<vmem>>, vector<1x128x128xbf16>
    %49 = vector.shape_cast %48 : vector<1x128x128xbf16> to vector<128x128xbf16>
    %c1_24 = arith.constant 1 : index
    %c0_25 = arith.constant 0 : index
    %c0_26 = arith.constant 0 : index
    %50 = vector.load %arg3[%c1_24, %c0_25, %c0_26] : memref<8x2x128xf32, #tpu.memory_space<vmem>>, vector<1x2x128xf32>
    %51 = vector.shape_cast %50 : vector<1x2x128xf32> to vector<2x128xf32>
    %52 = vector.extract_strided_slice %51 {offsets = [0, 0], sizes = [1, 128], strides = [1, 1]} : vector<2x128xf32> to vector<1x128xf32>
    %53 = vector.extract_strided_slice %51 {offsets = [1, 0], sizes = [1, 128], strides = [1, 1]} : vector<2x128xf32> to vector<1x128xf32>
    %54 = arith.truncf %44 : vector<32x128xf32> to vector<32x128xbf16>
    %cst_27 = arith.constant dense<0.000000e+00> : vector<32x128xf32>
    %55 = tpu.matmul %54, %49, %cst_27 {dimension_numbers = #tpu.dot_dimension_numbers<[1], [0], [0], [1], [0, 0, 1, 1], [], []>} : vector<32x128xbf16>, vector<128x128xbf16>, vector<32x128xf32> -> vector<32x128xf32>
    %56 = vector.broadcast %52 : vector<1x128xf32> to vector<32x128xf32>
    %57 = arith.mulf %55, %56 : vector<32x128xf32>
    %cst_28 = arith.constant dense<0.000000e+00> : vector<32xf32>
    %58 = vector.multi_reduction <add>, %57, %cst_28 [1] : vector<32x128xf32> to vector<32xf32>
    %59 = vector.shape_cast %58 : vector<32xf32> to vector<32x1xf32>
    %cst_29 = arith.constant dense<0.000000e+00> : vector<1x32xf32>
    %60 = tpu.matmul %53, %55, %cst_29 {dimension_numbers = #tpu.dot_dimension_numbers<[1], [1], [0], [0], [0, 0, 1, 0], [], []>} : vector<1x128xf32>, vector<32x128xf32>, vector<1x32xf32> -> vector<1x32xf32>
    %61 = vector.broadcast %59 : vector<32x1xf32> to vector<32x32xf32>
    %62 = vector.broadcast %60 : vector<1x32xf32> to vector<32x32xf32>
    %63 = arith.addf %61, %62 : vector<32x32xf32>
    %cst_30 = arith.constant 2.000000e-01 : f32
    %64 = vector.broadcast %cst_30 : f32 to vector<32x32xf32>
    %65 = arith.mulf %64, %63 : vector<32x32xf32>
    %66 = arith.maximumf %63, %65 : vector<32x32xf32>
    %67 = arith.addf %66, %6 : vector<32x32xf32>
    %cst_31 = arith.constant dense<0xFF800000> : vector<32xf32>
    %68 = vector.multi_reduction <maximumf>, %67, %cst_31 [1] : vector<32x32xf32> to vector<32xf32>
    %69 = vector.shape_cast %68 : vector<32xf32> to vector<32x1xf32>
    %70 = vector.broadcast %69 : vector<32x1xf32> to vector<32x32xf32>
    %71 = arith.subf %67, %70 : vector<32x32xf32>
    %72 = math.exp %71 : vector<32x32xf32>
    %cst_32 = arith.constant dense<0.000000e+00> : vector<32xf32>
    %73 = vector.multi_reduction <add>, %72, %cst_32 [1] : vector<32x32xf32> to vector<32xf32>
    %74 = vector.shape_cast %73 : vector<32xf32> to vector<32x1xf32>
    %75 = tpu.reciprocal %74 {approx = true} : vector<32x1xf32> -> vector<32x1xf32>
    %76 = arith.mulf %74, %75 : vector<32x1xf32>
    %cst_33 = arith.constant 2.000000e+00 : f32
    %77 = vector.broadcast %cst_33 : f32 to vector<32x1xf32>
    %78 = arith.subf %77, %76 : vector<32x1xf32>
    %79 = arith.mulf %75, %78 : vector<32x1xf32>
    %80 = vector.broadcast %79 : vector<32x1xf32> to vector<32x32xf32>
    %81 = arith.mulf %72, %80 : vector<32x32xf32>
    %82 = arith.truncf %81 : vector<32x32xf32> to vector<32x32xbf16>
    %83 = arith.truncf %55 : vector<32x128xf32> to vector<32x128xbf16>
    %cst_34 = arith.constant dense<0.000000e+00> : vector<32x128xf32>
    %84 = tpu.matmul %82, %83, %cst_34 {dimension_numbers = #tpu.dot_dimension_numbers<[1], [0], [0], [1], [0, 0, 1, 1], [], []>} : vector<32x32xbf16>, vector<32x128xbf16>, vector<32x128xf32> -> vector<32x128xf32>
    %c1_35 = arith.constant 1 : index
    %c0_36 = arith.constant 0 : index
    %c0_37 = arith.constant 0 : index
    %85 = vector.load %arg4[%c1_35, %c0_36, %c0_37] : memref<5x32x128xf32, #tpu.memory_space<vmem>>, vector<1x32x128xf32>
    %86 = vector.shape_cast %85 : vector<1x32x128xf32> to vector<32x128xf32>
    %87 = vector.shape_cast %84 : vector<32x128xf32> to vector<1x32x128xf32>
    tpu.vector_store %arg4[%c1_35, %c0_36, %c0_37], %87 {strides = array<i32>} : memref<5x32x128xf32, #tpu.memory_space<vmem>>, vector<1x32x128xf32>,
    %c2 = arith.constant 2 : index
    %c0_38 = arith.constant 0 : index
    %c0_39 = arith.constant 0 : index
    %88 = vector.load %arg2[%c2, %c0_38, %c0_39] : memref<8x128x128xbf16, #tpu.memory_space<vmem>>, vector<1x128x128xbf16>
    %89 = vector.shape_cast %88 : vector<1x128x128xbf16> to vector<128x128xbf16>
    %c2_40 = arith.constant 2 : index
    %c0_41 = arith.constant 0 : index
    %c0_42 = arith.constant 0 : index
    %90 = vector.load %arg3[%c2_40, %c0_41, %c0_42] : memref<8x2x128xf32, #tpu.memory_space<vmem>>, vector<1x2x128xf32>
    %91 = vector.shape_cast %90 : vector<1x2x128xf32> to vector<2x128xf32>
    %92 = vector.extract_strided_slice %91 {offsets = [0, 0], sizes = [1, 128], strides = [1, 1]} : vector<2x128xf32> to vector<1x128xf32>
    %93 = vector.extract_strided_slice %91 {offsets = [1, 0], sizes = [1, 128], strides = [1, 1]} : vector<2x128xf32> to vector<1x128xf32>
    %94 = arith.truncf %84 : vector<32x128xf32> to vector<32x128xbf16>
    %cst_43 = arith.constant dense<0.000000e+00> : vector<32x128xf32>
    %95 = tpu.matmul %94, %89, %cst_43 {dimension_numbers = #tpu.dot_dimension_numbers<[1], [0], [0], [1], [0, 0, 1, 1], [], []>} : vector<32x128xbf16>, vector<128x128xbf16>, vector<32x128xf32> -> vector<32x128xf32>
    %96 = vector.broadcast %92 : vector<1x128xf32> to vector<32x128xf32>
    %97 = arith.mulf %95, %96 : vector<32x128xf32>
    %cst_44 = arith.constant dense<0.000000e+00> : vector<32xf32>
    %98 = vector.multi_reduction <add>, %97, %cst_44 [1] : vector<32x128xf32> to vector<32xf32>
    %99 = vector.shape_cast %98 : vector<32xf32> to vector<32x1xf32>
    %cst_45 = arith.constant dense<0.000000e+00> : vector<1x32xf32>
    %100 = tpu.matmul %93, %95, %cst_45 {dimension_numbers = #tpu.dot_dimension_numbers<[1], [1], [0], [0], [0, 0, 1, 0], [], []>} : vector<1x128xf32>, vector<32x128xf32>, vector<1x32xf32> -> vector<1x32xf32>
    %101 = vector.broadcast %99 : vector<32x1xf32> to vector<32x32xf32>
    %102 = vector.broadcast %100 : vector<1x32xf32> to vector<32x32xf32>
    %103 = arith.addf %101, %102 : vector<32x32xf32>
    %cst_46 = arith.constant 2.000000e-01 : f32
    %104 = vector.broadcast %cst_46 : f32 to vector<32x32xf32>
    %105 = arith.mulf %104, %103 : vector<32x32xf32>
    %106 = arith.maximumf %103, %105 : vector<32x32xf32>
    %107 = arith.addf %106, %6 : vector<32x32xf32>
    %cst_47 = arith.constant dense<0xFF800000> : vector<32xf32>
    %108 = vector.multi_reduction <maximumf>, %107, %cst_47 [1] : vector<32x32xf32> to vector<32xf32>
    %109 = vector.shape_cast %108 : vector<32xf32> to vector<32x1xf32>
    %110 = vector.broadcast %109 : vector<32x1xf32> to vector<32x32xf32>
    %111 = arith.subf %107, %110 : vector<32x32xf32>
    %112 = math.exp %111 : vector<32x32xf32>
    %cst_48 = arith.constant dense<0.000000e+00> : vector<32xf32>
    %113 = vector.multi_reduction <add>, %112, %cst_48 [1] : vector<32x32xf32> to vector<32xf32>
    %114 = vector.shape_cast %113 : vector<32xf32> to vector<32x1xf32>
    %115 = tpu.reciprocal %114 {approx = true} : vector<32x1xf32> -> vector<32x1xf32>
    %116 = arith.mulf %114, %115 : vector<32x1xf32>
    %cst_49 = arith.constant 2.000000e+00 : f32
    %117 = vector.broadcast %cst_49 : f32 to vector<32x1xf32>
    %118 = arith.subf %117, %116 : vector<32x1xf32>
    %119 = arith.mulf %115, %118 : vector<32x1xf32>
    %120 = vector.broadcast %119 : vector<32x1xf32> to vector<32x32xf32>
    %121 = arith.mulf %112, %120 : vector<32x32xf32>
    %122 = arith.truncf %121 : vector<32x32xf32> to vector<32x32xbf16>
    %123 = arith.truncf %95 : vector<32x128xf32> to vector<32x128xbf16>
    %cst_50 = arith.constant dense<0.000000e+00> : vector<32x128xf32>
    %124 = tpu.matmul %122, %123, %cst_50 {dimension_numbers = #tpu.dot_dimension_numbers<[1], [0], [0], [1], [0, 0, 1, 1], [], []>} : vector<32x32xbf16>, vector<32x128xbf16>, vector<32x128xf32> -> vector<32x128xf32>
    %c2_51 = arith.constant 2 : index
    %c0_52 = arith.constant 0 : index
    %c0_53 = arith.constant 0 : index
    %125 = vector.load %arg4[%c2_51, %c0_52, %c0_53] : memref<5x32x128xf32, #tpu.memory_space<vmem>>, vector<1x32x128xf32>
    %126 = vector.shape_cast %125 : vector<1x32x128xf32> to vector<32x128xf32>
    %127 = vector.shape_cast %124 : vector<32x128xf32> to vector<1x32x128xf32>
    tpu.vector_store %arg4[%c2_51, %c0_52, %c0_53], %127 {strides = array<i32>} : memref<5x32x128xf32, #tpu.memory_space<vmem>>, vector<1x32x128xf32>,
    %c3 = arith.constant 3 : index
    %c0_54 = arith.constant 0 : index
    %c0_55 = arith.constant 0 : index
    %128 = vector.load %arg2[%c3, %c0_54, %c0_55] : memref<8x128x128xbf16, #tpu.memory_space<vmem>>, vector<1x128x128xbf16>
    %129 = vector.shape_cast %128 : vector<1x128x128xbf16> to vector<128x128xbf16>
    %c3_56 = arith.constant 3 : index
    %c0_57 = arith.constant 0 : index
    %c0_58 = arith.constant 0 : index
    %130 = vector.load %arg3[%c3_56, %c0_57, %c0_58] : memref<8x2x128xf32, #tpu.memory_space<vmem>>, vector<1x2x128xf32>
    %131 = vector.shape_cast %130 : vector<1x2x128xf32> to vector<2x128xf32>
    %132 = vector.extract_strided_slice %131 {offsets = [0, 0], sizes = [1, 128], strides = [1, 1]} : vector<2x128xf32> to vector<1x128xf32>
    %133 = vector.extract_strided_slice %131 {offsets = [1, 0], sizes = [1, 128], strides = [1, 1]} : vector<2x128xf32> to vector<1x128xf32>
    %134 = arith.truncf %124 : vector<32x128xf32> to vector<32x128xbf16>
    %cst_59 = arith.constant dense<0.000000e+00> : vector<32x128xf32>
    %135 = tpu.matmul %134, %129, %cst_59 {dimension_numbers = #tpu.dot_dimension_numbers<[1], [0], [0], [1], [0, 0, 1, 1], [], []>} : vector<32x128xbf16>, vector<128x128xbf16>, vector<32x128xf32> -> vector<32x128xf32>
    %136 = vector.broadcast %132 : vector<1x128xf32> to vector<32x128xf32>
    %137 = arith.mulf %135, %136 : vector<32x128xf32>
    %cst_60 = arith.constant dense<0.000000e+00> : vector<32xf32>
    %138 = vector.multi_reduction <add>, %137, %cst_60 [1] : vector<32x128xf32> to vector<32xf32>
    %139 = vector.shape_cast %138 : vector<32xf32> to vector<32x1xf32>
    %cst_61 = arith.constant dense<0.000000e+00> : vector<1x32xf32>
    %140 = tpu.matmul %133, %135, %cst_61 {dimension_numbers = #tpu.dot_dimension_numbers<[1], [1], [0], [0], [0, 0, 1, 0], [], []>} : vector<1x128xf32>, vector<32x128xf32>, vector<1x32xf32> -> vector<1x32xf32>
    %141 = vector.broadcast %139 : vector<32x1xf32> to vector<32x32xf32>
    %142 = vector.broadcast %140 : vector<1x32xf32> to vector<32x32xf32>
    %143 = arith.addf %141, %142 : vector<32x32xf32>
    %cst_62 = arith.constant 2.000000e-01 : f32
    %144 = vector.broadcast %cst_62 : f32 to vector<32x32xf32>
    %145 = arith.mulf %144, %143 : vector<32x32xf32>
    %146 = arith.maximumf %143, %145 : vector<32x32xf32>
    %147 = arith.addf %146, %6 : vector<32x32xf32>
    %cst_63 = arith.constant dense<0xFF800000> : vector<32xf32>
    %148 = vector.multi_reduction <maximumf>, %147, %cst_63 [1] : vector<32x32xf32> to vector<32xf32>
    %149 = vector.shape_cast %148 : vector<32xf32> to vector<32x1xf32>
    %150 = vector.broadcast %149 : vector<32x1xf32> to vector<32x32xf32>
    %151 = arith.subf %147, %150 : vector<32x32xf32>
    %152 = math.exp %151 : vector<32x32xf32>
    %cst_64 = arith.constant dense<0.000000e+00> : vector<32xf32>
    %153 = vector.multi_reduction <add>, %152, %cst_64 [1] : vector<32x32xf32> to vector<32xf32>
    %154 = vector.shape_cast %153 : vector<32xf32> to vector<32x1xf32>
    %155 = tpu.reciprocal %154 {approx = true} : vector<32x1xf32> -> vector<32x1xf32>
    %156 = arith.mulf %154, %155 : vector<32x1xf32>
    %cst_65 = arith.constant 2.000000e+00 : f32
    %157 = vector.broadcast %cst_65 : f32 to vector<32x1xf32>
    %158 = arith.subf %157, %156 : vector<32x1xf32>
    %159 = arith.mulf %155, %158 : vector<32x1xf32>
    %160 = vector.broadcast %159 : vector<32x1xf32> to vector<32x32xf32>
    %161 = arith.mulf %152, %160 : vector<32x32xf32>
    %162 = arith.truncf %161 : vector<32x32xf32> to vector<32x32xbf16>
    %163 = arith.truncf %135 : vector<32x128xf32> to vector<32x128xbf16>
    %cst_66 = arith.constant dense<0.000000e+00> : vector<32x128xf32>
    %164 = tpu.matmul %162, %163, %cst_66 {dimension_numbers = #tpu.dot_dimension_numbers<[1], [0], [0], [1], [0, 0, 1, 1], [], []>} : vector<32x32xbf16>, vector<32x128xbf16>, vector<32x128xf32> -> vector<32x128xf32>
    %c3_67 = arith.constant 3 : index
    %c0_68 = arith.constant 0 : index
    %c0_69 = arith.constant 0 : index
    %165 = vector.load %arg4[%c3_67, %c0_68, %c0_69] : memref<5x32x128xf32, #tpu.memory_space<vmem>>, vector<1x32x128xf32>
    %166 = vector.shape_cast %165 : vector<1x32x128xf32> to vector<32x128xf32>
    %167 = vector.shape_cast %164 : vector<32x128xf32> to vector<1x32x128xf32>
    tpu.vector_store %arg4[%c3_67, %c0_68, %c0_69], %167 {strides = array<i32>} : memref<5x32x128xf32, #tpu.memory_space<vmem>>, vector<1x32x128xf32>,
    %c4 = arith.constant 4 : index
    %c0_70 = arith.constant 0 : index
    %c0_71 = arith.constant 0 : index
    %168 = vector.load %arg2[%c4, %c0_70, %c0_71] : memref<8x128x128xbf16, #tpu.memory_space<vmem>>, vector<1x128x128xbf16>
    %169 = vector.shape_cast %168 : vector<1x128x128xbf16> to vector<128x128xbf16>
    %c4_72 = arith.constant 4 : index
    %c0_73 = arith.constant 0 : index
    %c0_74 = arith.constant 0 : index
    %170 = vector.load %arg3[%c4_72, %c0_73, %c0_74] : memref<8x2x128xf32, #tpu.memory_space<vmem>>, vector<1x2x128xf32>
    %171 = vector.shape_cast %170 : vector<1x2x128xf32> to vector<2x128xf32>
    %172 = vector.extract_strided_slice %171 {offsets = [0, 0], sizes = [1, 128], strides = [1, 1]} : vector<2x128xf32> to vector<1x128xf32>
    %173 = vector.extract_strided_slice %171 {offsets = [1, 0], sizes = [1, 128], strides = [1, 1]} : vector<2x128xf32> to vector<1x128xf32>
    %174 = arith.truncf %164 : vector<32x128xf32> to vector<32x128xbf16>
    %cst_75 = arith.constant dense<0.000000e+00> : vector<32x128xf32>
    %175 = tpu.matmul %174, %169, %cst_75 {dimension_numbers = #tpu.dot_dimension_numbers<[1], [0], [0], [1], [0, 0, 1, 1], [], []>} : vector<32x128xbf16>, vector<128x128xbf16>, vector<32x128xf32> -> vector<32x128xf32>
    %176 = vector.broadcast %172 : vector<1x128xf32> to vector<32x128xf32>
    %177 = arith.mulf %175, %176 : vector<32x128xf32>
    %cst_76 = arith.constant dense<0.000000e+00> : vector<32xf32>
    %178 = vector.multi_reduction <add>, %177, %cst_76 [1] : vector<32x128xf32> to vector<32xf32>
    %179 = vector.shape_cast %178 : vector<32xf32> to vector<32x1xf32>
    %cst_77 = arith.constant dense<0.000000e+00> : vector<1x32xf32>
    %180 = tpu.matmul %173, %175, %cst_77 {dimension_numbers = #tpu.dot_dimension_numbers<[1], [1], [0], [0], [0, 0, 1, 0], [], []>} : vector<1x128xf32>, vector<32x128xf32>, vector<1x32xf32> -> vector<1x32xf32>
    %181 = vector.broadcast %179 : vector<32x1xf32> to vector<32x32xf32>
    %182 = vector.broadcast %180 : vector<1x32xf32> to vector<32x32xf32>
    %183 = arith.addf %181, %182 : vector<32x32xf32>
    %cst_78 = arith.constant 2.000000e-01 : f32
    %184 = vector.broadcast %cst_78 : f32 to vector<32x32xf32>
    %185 = arith.mulf %184, %183 : vector<32x32xf32>
    %186 = arith.maximumf %183, %185 : vector<32x32xf32>
    %187 = arith.addf %186, %6 : vector<32x32xf32>
    %cst_79 = arith.constant dense<0xFF800000> : vector<32xf32>
    %188 = vector.multi_reduction <maximumf>, %187, %cst_79 [1] : vector<32x32xf32> to vector<32xf32>
    %189 = vector.shape_cast %188 : vector<32xf32> to vector<32x1xf32>
    %190 = vector.broadcast %189 : vector<32x1xf32> to vector<32x32xf32>
    %191 = arith.subf %187, %190 : vector<32x32xf32>
    %192 = math.exp %191 : vector<32x32xf32>
    %cst_80 = arith.constant dense<0.000000e+00> : vector<32xf32>
    %193 = vector.multi_reduction <add>, %192, %cst_80 [1] : vector<32x32xf32> to vector<32xf32>
    %194 = vector.shape_cast %193 : vector<32xf32> to vector<32x1xf32>
    %195 = tpu.reciprocal %194 {approx = true} : vector<32x1xf32> -> vector<32x1xf32>
    %196 = arith.mulf %194, %195 : vector<32x1xf32>
    %cst_81 = arith.constant 2.000000e+00 : f32
    %197 = vector.broadcast %cst_81 : f32 to vector<32x1xf32>
    %198 = arith.subf %197, %196 : vector<32x1xf32>
    %199 = arith.mulf %195, %198 : vector<32x1xf32>
    %200 = vector.broadcast %199 : vector<32x1xf32> to vector<32x32xf32>
    %201 = arith.mulf %192, %200 : vector<32x32xf32>
    %202 = arith.truncf %201 : vector<32x32xf32> to vector<32x32xbf16>
    %203 = arith.truncf %175 : vector<32x128xf32> to vector<32x128xbf16>
    %cst_82 = arith.constant dense<0.000000e+00> : vector<32x128xf32>
    %204 = tpu.matmul %202, %203, %cst_82 {dimension_numbers = #tpu.dot_dimension_numbers<[1], [0], [0], [1], [0, 0, 1, 1], [], []>} : vector<32x32xbf16>, vector<32x128xbf16>, vector<32x128xf32> -> vector<32x128xf32>
    %c5 = arith.constant 5 : index
    %c0_83 = arith.constant 0 : index
    %c0_84 = arith.constant 0 : index
    %205 = vector.load %arg2[%c5, %c0_83, %c0_84] : memref<8x128x128xbf16, #tpu.memory_space<vmem>>, vector<1x128x128xbf16>
    %206 = vector.shape_cast %205 : vector<1x128x128xbf16> to vector<128x128xbf16>
    %c5_85 = arith.constant 5 : index
    %c0_86 = arith.constant 0 : index
    %c0_87 = arith.constant 0 : index
    %207 = vector.load %arg3[%c5_85, %c0_86, %c0_87] : memref<8x2x128xf32, #tpu.memory_space<vmem>>, vector<1x2x128xf32>
    %208 = vector.shape_cast %207 : vector<1x2x128xf32> to vector<2x128xf32>
    %209 = vector.extract_strided_slice %208 {offsets = [0, 0], sizes = [1, 128], strides = [1, 1]} : vector<2x128xf32> to vector<1x128xf32>
    %210 = vector.extract_strided_slice %208 {offsets = [1, 0], sizes = [1, 128], strides = [1, 1]} : vector<2x128xf32> to vector<1x128xf32>
    %211 = arith.truncf %204 : vector<32x128xf32> to vector<32x128xbf16>
    %cst_88 = arith.constant dense<0.000000e+00> : vector<32x128xf32>
    %212 = tpu.matmul %211, %206, %cst_88 {dimension_numbers = #tpu.dot_dimension_numbers<[1], [0], [0], [1], [0, 0, 1, 1], [], []>} : vector<32x128xbf16>, vector<128x128xbf16>, vector<32x128xf32> -> vector<32x128xf32>
    %213 = vector.broadcast %209 : vector<1x128xf32> to vector<32x128xf32>
    %214 = arith.mulf %212, %213 : vector<32x128xf32>
    %cst_89 = arith.constant dense<0.000000e+00> : vector<32xf32>
    %215 = vector.multi_reduction <add>, %214, %cst_89 [1] : vector<32x128xf32> to vector<32xf32>
    %216 = vector.shape_cast %215 : vector<32xf32> to vector<32x1xf32>
    %cst_90 = arith.constant dense<0.000000e+00> : vector<1x32xf32>
    %217 = tpu.matmul %210, %212, %cst_90 {dimension_numbers = #tpu.dot_dimension_numbers<[1], [1], [0], [0], [0, 0, 1, 0], [], []>} : vector<1x128xf32>, vector<32x128xf32>, vector<1x32xf32> -> vector<1x32xf32>
    %218 = vector.broadcast %216 : vector<32x1xf32> to vector<32x32xf32>
    %219 = vector.broadcast %217 : vector<1x32xf32> to vector<32x32xf32>
    %220 = arith.addf %218, %219 : vector<32x32xf32>
    %cst_91 = arith.constant 2.000000e-01 : f32
    %221 = vector.broadcast %cst_91 : f32 to vector<32x32xf32>
    %222 = arith.mulf %221, %220 : vector<32x32xf32>
    %223 = arith.maximumf %220, %222 : vector<32x32xf32>
    %224 = arith.addf %223, %6 : vector<32x32xf32>
    %cst_92 = arith.constant dense<0xFF800000> : vector<32xf32>
    %225 = vector.multi_reduction <maximumf>, %224, %cst_92 [1] : vector<32x32xf32> to vector<32xf32>
    %226 = vector.shape_cast %225 : vector<32xf32> to vector<32x1xf32>
    %227 = vector.broadcast %226 : vector<32x1xf32> to vector<32x32xf32>
    %228 = arith.subf %224, %227 : vector<32x32xf32>
    %229 = math.exp %228 : vector<32x32xf32>
    %cst_93 = arith.constant dense<0.000000e+00> : vector<32xf32>
    %230 = vector.multi_reduction <add>, %229, %cst_93 [1] : vector<32x32xf32> to vector<32xf32>
    %231 = vector.shape_cast %230 : vector<32xf32> to vector<32x1xf32>
    %232 = tpu.reciprocal %231 {approx = true} : vector<32x1xf32> -> vector<32x1xf32>
    %233 = arith.mulf %231, %232 : vector<32x1xf32>
    %cst_94 = arith.constant 2.000000e+00 : f32
    %234 = vector.broadcast %cst_94 : f32 to vector<32x1xf32>
    %235 = arith.subf %234, %233 : vector<32x1xf32>
    %236 = arith.mulf %232, %235 : vector<32x1xf32>
    %237 = vector.broadcast %236 : vector<32x1xf32> to vector<32x32xf32>
    %238 = arith.mulf %229, %237 : vector<32x32xf32>
    %239 = arith.truncf %238 : vector<32x32xf32> to vector<32x32xbf16>
    %240 = arith.truncf %212 : vector<32x128xf32> to vector<32x128xbf16>
    %cst_95 = arith.constant dense<0.000000e+00> : vector<32x128xf32>
    %241 = tpu.matmul %239, %240, %cst_95 {dimension_numbers = #tpu.dot_dimension_numbers<[1], [0], [0], [1], [0, 0, 1, 1], [], []>} : vector<32x32xbf16>, vector<32x128xbf16>, vector<32x128xf32> -> vector<32x128xf32>
    %c6 = arith.constant 6 : index
    %c0_96 = arith.constant 0 : index
    %c0_97 = arith.constant 0 : index
    %242 = vector.load %arg2[%c6, %c0_96, %c0_97] : memref<8x128x128xbf16, #tpu.memory_space<vmem>>, vector<1x128x128xbf16>
    %243 = vector.shape_cast %242 : vector<1x128x128xbf16> to vector<128x128xbf16>
    %c6_98 = arith.constant 6 : index
    %c0_99 = arith.constant 0 : index
    %c0_100 = arith.constant 0 : index
    %244 = vector.load %arg3[%c6_98, %c0_99, %c0_100] : memref<8x2x128xf32, #tpu.memory_space<vmem>>, vector<1x2x128xf32>
    %245 = vector.shape_cast %244 : vector<1x2x128xf32> to vector<2x128xf32>
    %246 = vector.extract_strided_slice %245 {offsets = [0, 0], sizes = [1, 128], strides = [1, 1]} : vector<2x128xf32> to vector<1x128xf32>
    %247 = vector.extract_strided_slice %245 {offsets = [1, 0], sizes = [1, 128], strides = [1, 1]} : vector<2x128xf32> to vector<1x128xf32>
    %248 = arith.truncf %241 : vector<32x128xf32> to vector<32x128xbf16>
    %cst_101 = arith.constant dense<0.000000e+00> : vector<32x128xf32>
    %249 = tpu.matmul %248, %243, %cst_101 {dimension_numbers = #tpu.dot_dimension_numbers<[1], [0], [0], [1], [0, 0, 1, 1], [], []>} : vector<32x128xbf16>, vector<128x128xbf16>, vector<32x128xf32> -> vector<32x128xf32>
    %250 = vector.broadcast %246 : vector<1x128xf32> to vector<32x128xf32>
    %251 = arith.mulf %249, %250 : vector<32x128xf32>
    %cst_102 = arith.constant dense<0.000000e+00> : vector<32xf32>
    %252 = vector.multi_reduction <add>, %251, %cst_102 [1] : vector<32x128xf32> to vector<32xf32>
    %253 = vector.shape_cast %252 : vector<32xf32> to vector<32x1xf32>
    %cst_103 = arith.constant dense<0.000000e+00> : vector<1x32xf32>
    %254 = tpu.matmul %247, %249, %cst_103 {dimension_numbers = #tpu.dot_dimension_numbers<[1], [1], [0], [0], [0, 0, 1, 0], [], []>} : vector<1x128xf32>, vector<32x128xf32>, vector<1x32xf32> -> vector<1x32xf32>
    %255 = vector.broadcast %253 : vector<32x1xf32> to vector<32x32xf32>
    %256 = vector.broadcast %254 : vector<1x32xf32> to vector<32x32xf32>
    %257 = arith.addf %255, %256 : vector<32x32xf32>
    %cst_104 = arith.constant 2.000000e-01 : f32
    %258 = vector.broadcast %cst_104 : f32 to vector<32x32xf32>
    %259 = arith.mulf %258, %257 : vector<32x32xf32>
    %260 = arith.maximumf %257, %259 : vector<32x32xf32>
    %261 = arith.addf %260, %6 : vector<32x32xf32>
    %cst_105 = arith.constant dense<0xFF800000> : vector<32xf32>
    %262 = vector.multi_reduction <maximumf>, %261, %cst_105 [1] : vector<32x32xf32> to vector<32xf32>
    %263 = vector.shape_cast %262 : vector<32xf32> to vector<32x1xf32>
    %264 = vector.broadcast %263 : vector<32x1xf32> to vector<32x32xf32>
    %265 = arith.subf %261, %264 : vector<32x32xf32>
    %266 = math.exp %265 : vector<32x32xf32>
    %cst_106 = arith.constant dense<0.000000e+00> : vector<32xf32>
    %267 = vector.multi_reduction <add>, %266, %cst_106 [1] : vector<32x32xf32> to vector<32xf32>
    %268 = vector.shape_cast %267 : vector<32xf32> to vector<32x1xf32>
    %269 = tpu.reciprocal %268 {approx = true} : vector<32x1xf32> -> vector<32x1xf32>
    %270 = arith.mulf %268, %269 : vector<32x1xf32>
    %cst_107 = arith.constant 2.000000e+00 : f32
    %271 = vector.broadcast %cst_107 : f32 to vector<32x1xf32>
    %272 = arith.subf %271, %270 : vector<32x1xf32>
    %273 = arith.mulf %269, %272 : vector<32x1xf32>
    %274 = vector.broadcast %273 : vector<32x1xf32> to vector<32x32xf32>
    %275 = arith.mulf %266, %274 : vector<32x32xf32>
    %276 = arith.truncf %275 : vector<32x32xf32> to vector<32x32xbf16>
    %277 = arith.truncf %249 : vector<32x128xf32> to vector<32x128xbf16>
    %cst_108 = arith.constant dense<0.000000e+00> : vector<32x128xf32>
    %278 = tpu.matmul %276, %277, %cst_108 {dimension_numbers = #tpu.dot_dimension_numbers<[1], [0], [0], [1], [0, 0, 1, 1], [], []>} : vector<32x32xbf16>, vector<32x128xbf16>, vector<32x128xf32> -> vector<32x128xf32>
    %c7 = arith.constant 7 : index
    %c0_109 = arith.constant 0 : index
    %c0_110 = arith.constant 0 : index
    %279 = vector.load %arg2[%c7, %c0_109, %c0_110] : memref<8x128x128xbf16, #tpu.memory_space<vmem>>, vector<1x128x128xbf16>
    %280 = vector.shape_cast %279 : vector<1x128x128xbf16> to vector<128x128xbf16>
    %c7_111 = arith.constant 7 : index
    %c0_112 = arith.constant 0 : index
    %c0_113 = arith.constant 0 : index
    %281 = vector.load %arg3[%c7_111, %c0_112, %c0_113] : memref<8x2x128xf32, #tpu.memory_space<vmem>>, vector<1x2x128xf32>
    %282 = vector.shape_cast %281 : vector<1x2x128xf32> to vector<2x128xf32>
    %283 = vector.extract_strided_slice %282 {offsets = [0, 0], sizes = [1, 128], strides = [1, 1]} : vector<2x128xf32> to vector<1x128xf32>
    %284 = vector.extract_strided_slice %282 {offsets = [1, 0], sizes = [1, 128], strides = [1, 1]} : vector<2x128xf32> to vector<1x128xf32>
    %285 = arith.truncf %278 : vector<32x128xf32> to vector<32x128xbf16>
    %cst_114 = arith.constant dense<0.000000e+00> : vector<32x128xf32>
    %286 = tpu.matmul %285, %280, %cst_114 {dimension_numbers = #tpu.dot_dimension_numbers<[1], [0], [0], [1], [0, 0, 1, 1], [], []>} : vector<32x128xbf16>, vector<128x128xbf16>, vector<32x128xf32> -> vector<32x128xf32>
    %287 = vector.broadcast %283 : vector<1x128xf32> to vector<32x128xf32>
    %288 = arith.mulf %286, %287 : vector<32x128xf32>
    %cst_115 = arith.constant dense<0.000000e+00> : vector<32xf32>
    %289 = vector.multi_reduction <add>, %288, %cst_115 [1] : vector<32x128xf32> to vector<32xf32>
    %290 = vector.shape_cast %289 : vector<32xf32> to vector<32x1xf32>
    %cst_116 = arith.constant dense<0.000000e+00> : vector<1x32xf32>
    %291 = tpu.matmul %284, %286, %cst_116 {dimension_numbers = #tpu.dot_dimension_numbers<[1], [1], [0], [0], [0, 0, 1, 0], [], []>} : vector<1x128xf32>, vector<32x128xf32>, vector<1x32xf32> -> vector<1x32xf32>
    %292 = vector.broadcast %290 : vector<32x1xf32> to vector<32x32xf32>
    %293 = vector.broadcast %291 : vector<1x32xf32> to vector<32x32xf32>
    %294 = arith.addf %292, %293 : vector<32x32xf32>
    %cst_117 = arith.constant 2.000000e-01 : f32
    %295 = vector.broadcast %cst_117 : f32 to vector<32x32xf32>
    %296 = arith.mulf %295, %294 : vector<32x32xf32>
    %297 = arith.maximumf %294, %296 : vector<32x32xf32>
    %298 = arith.addf %297, %6 : vector<32x32xf32>
    %cst_118 = arith.constant dense<0xFF800000> : vector<32xf32>
    %299 = vector.multi_reduction <maximumf>, %298, %cst_118 [1] : vector<32x32xf32> to vector<32xf32>
    %300 = vector.shape_cast %299 : vector<32xf32> to vector<32x1xf32>
    %301 = vector.broadcast %300 : vector<32x1xf32> to vector<32x32xf32>
    %302 = arith.subf %298, %301 : vector<32x32xf32>
    %303 = math.exp %302 : vector<32x32xf32>
    %cst_119 = arith.constant dense<0.000000e+00> : vector<32xf32>
    %304 = vector.multi_reduction <add>, %303, %cst_119 [1] : vector<32x32xf32> to vector<32xf32>
    %305 = vector.shape_cast %304 : vector<32xf32> to vector<32x1xf32>
    %306 = tpu.reciprocal %305 {approx = true} : vector<32x1xf32> -> vector<32x1xf32>
    %307 = arith.mulf %305, %306 : vector<32x1xf32>
    %cst_120 = arith.constant 2.000000e+00 : f32
    %308 = vector.broadcast %cst_120 : f32 to vector<32x1xf32>
    %309 = arith.subf %308, %307 : vector<32x1xf32>
    %310 = arith.mulf %306, %309 : vector<32x1xf32>
    %311 = vector.broadcast %310 : vector<32x1xf32> to vector<32x32xf32>
    %312 = arith.mulf %303, %311 : vector<32x32xf32>
    %313 = arith.truncf %312 : vector<32x32xf32> to vector<32x32xbf16>
    %314 = arith.truncf %286 : vector<32x128xf32> to vector<32x128xbf16>
    %cst_121 = arith.constant dense<0.000000e+00> : vector<32x128xf32>
    %315 = tpu.matmul %313, %314, %cst_121 {dimension_numbers = #tpu.dot_dimension_numbers<[1], [0], [0], [1], [0, 0, 1, 1], [], []>} : vector<32x32xbf16>, vector<32x128xbf16>, vector<32x128xf32> -> vector<32x128xf32>
    %c4_122 = arith.constant 4 : index
    %c0_123 = arith.constant 0 : index
    %c0_124 = arith.constant 0 : index
    %316 = vector.load %arg4[%c4_122, %c0_123, %c0_124] : memref<5x32x128xf32, #tpu.memory_space<vmem>>, vector<1x32x128xf32>
    %317 = vector.shape_cast %316 : vector<1x32x128xf32> to vector<32x128xf32>
    %318 = vector.shape_cast %315 : vector<32x128xf32> to vector<1x32x128xf32>
    tpu.vector_store %arg4[%c4_122, %c0_123, %c0_124], %318 {strides = array<i32>} : memref<5x32x128xf32, #tpu.memory_space<vmem>>, vector<1x32x128xf32>,
    return
  }
}

</mosaic_0001>

<bundles_post_ra>
// kernel: gae_forward.1
= control target key start
LH: loop header
LB: loop body
LE: loop exit
PB: predicated region body
PF: predicated region fallthrough
CT: control target
= control target key end

     0   :  { %v3725_v14 = vmov 0.0|0.0   ;;  %vm3726_vm0 = vmmov 0   ;;  %v3727_v15 = vmov 0.0   ;;  %v155_v16 = vlaneseq  ;;  %s4215_s2 = inlined_call_operand.vmem [shape: bf16[8,128,128], index: 2, kind: input, shape index: {}]   ;;  %s4216_s0 = inlined_call_operand.vmem [shape: f32[32,128], index: 0, kind: input, shape index: {}]   ;;  %s4217_s3 = inlined_call_operand.vmem [shape: f32[8,2,128], index: 3, kind: input, shape index: {}]   ;;  %s4218_s1 = inlined_call_operand.vmem [shape: s8[32,32], index: 1, kind: input, shape index: {}]   ;;  %s4219_s4 = inlined_call_operand.vmem [shape: f32[5,32,128], index: 4, kind: output, shape index: {}]  }
   0x1   :  { %v3533_v0 = vld [vmem:[%s4215_s2] sm:$0xff]   ;;  %v3534_v1 = vld [vmem:[%s4215_s2 + $0x8] sm:$0xff]   ;;  %v3535_v2 = vld [vmem:[%s4215_s2 + $0x10] sm:$0xff]   ;;  %3481 = vmatprep.subr.bf16.mxu1 %v3725_v14  ;;  %3197 = vmatprep.mubr.msk.f32.mxu1 %vm3726_vm0, %v3727_v15  ;;  %v3728_v55 = vmov -9e+16   ;;  %vm264_vm5 = vcmask 261120  }
   0x2   :  { %3169 = vmatprep.subr.bf16.mxu0 %v3533_v0  ;;  %v3536_v3 = vld [vmem:[%s4215_s2 + $0x18] sm:$0xff]   ;;  %v35_v4 = vld [vmem:[%s4216_s0] sm:$0xff]  ;;  %v36_v5 = vld [vmem:[%s4216_s0 + $0x8] sm:$0xff]  ;;  %v156_v17 = vshrl.u32 %v155_v16, 7 }
   0x3   :  { %3170 = vmatpush3.bf16.msra.mxu0 %v3533_v0  ;;  %v56_v6 = vpack.c.bf16 %v36_v5, %v35_v4  ;;  %v3537_v7 = vld [vmem:[%s4215_s2 + $0x20] sm:$0xff]   ;;  %v3538_v8 = vld [vmem:[%s4215_s2 + $0x28] sm:$0xff]   ;;  %v3539_v9 = vld [vmem:[%s4215_s2 + $0x30] sm:$0xff]  }
   0x4   :  { %3171 = vmatprep.subr.bf16.mxu0 %v3534_v1  ;;  %v3540_v10 = vld [vmem:[%s4215_s2 + $0x38] sm:$0xff]   ;;  %v37_v11 = vld [vmem:[%s4216_s0 + $0x10] sm:$0xff]  ;;  %v3796_v18 = vsub.s32 0, %v156_v17  ;;  %v55_v19 = vld [vmem:[%s4217_s3] sm:$0x3] }
   0x5   :  { %3185 = vmatprep.mubr.bf16.mxu0 %v56_v6  ;;  %v38_v12 = vld [vmem:[%s4216_s0 + $0x18] sm:$0xff]  ;;  %v172_v31 = vrot.slane %v55_v19, 1  ;;  %v18_v32 = vld [vmem:[%s4218_s1] sm:$0xff] }
   0x6   :  { %v57_v13 = vpack.c.bf16 %v38_v12, %v37_v11  ;;  %v158_v20 = vrot.slane %v55_v19, %v3796_v18  ;;  %v19_v33 = vunpack.c.0.s8 %v18_v32  ;;  %v20_v34 = vunpack.c.1.s8 %v18_v32 }
   0x7   :  { %3172 = vmatpush3.bf16.msra.mxu0 %v3534_v1  ;;  %v21_v37 = vunpack.c.2.s8 %v18_v32  ;;  %v22_v38 = vunpack.c.3.s8 %v18_v32  ;;  %v3541_v32 = vld [vmem:[%s4215_s2 + $0x40] sm:$0xff]  }
   0x8   :  { %3173 = vmatprep.subr.bf16.mxu0 %v3535_v2  ;;  %v23_v39 = vcvt.s32.f32 %v19_v33  ;;  %v24_v40 = vcvt.s32.f32 %v20_v34 }
   0x9   :  { %v25_v42 = vcvt.s32.f32 %v21_v37  ;;  %v26_v43 = vcvt.s32.f32 %v22_v38 }
   0xa   :  { %vm27_vm1 = vcmp.gt.f32.partialorder %v23_v39, 0.0  ;;  %vm28_vm2 = vcmp.gt.f32.partialorder %v24_v40, 0.0 }
   0xb   :  { %3174 = vmatpush3.bf16.msra.mxu0 %v3535_v2  ;;  %vm29_vm3 = vcmp.gt.f32.partialorder %v25_v42, 0.0  ;;  %vm30_vm4 = vcmp.gt.f32.partialorder %v26_v43, 0.0  ;;  %v3807_v56 = vsel %vm27_vm1, 0.0, %v3728_v55  ;;  %v3809_v57 = vsel %vm28_vm2, 0.0, %v3728_v55 }
   0xc   :  { %3175 = vmatprep.subr.bf16.mxu0 %v3536_v3  ;;  %v3811_v62 = vsel %vm29_vm3, 0.0, %v3728_v55  ;;  %v3813_v63 = vsel %vm30_vm4, 0.0, %v3728_v55 }
   0xf   :  { %3176 = vmatpush3.bf16.msra.mxu0 %v3536_v3 }
  0x10   :  { %3177 = vmatprep.subr.bf16.mxu0 %v3537_v7 }
  0x13   :  { %3178 = vmatpush3.bf16.msra.mxu0 %v3537_v7 }
  0x14   :  { %3179 = vmatprep.subr.bf16.mxu0 %v3538_v8 }
  0x17   :  { %3180 = vmatpush3.bf16.msra.mxu0 %v3538_v8 }
  0x18   :  { %3181 = vmatprep.subr.bf16.mxu0 %v3539_v9 }
  0x1b   :  { %3182 = vmatpush3.bf16.msra.mxu0 %v3539_v9 }
  0x1c   :  { %3183 = vmatprep.subr.bf16.mxu0 %v3540_v10 }
  0x1f   :  { %3184 = vmatpush3.bf16.msra.mxu0 %v3540_v10 }
  0x20   :  { %3487 = vmatprep.subr.bf16.mxu0 %v3725_v14 }
  0x22   :  { %3186 = vmatmul.mubr.bf16.vlgmr.msra.gmra.mrb[0].mxu0 %v57_v13 }
  0x23   :  { %3236 = vmatprep.mubr.msk.f32.mxu0 %vm3726_vm0, %v3727_v15 }
  0xf5   :  { %v3187_v21 = vpop.f32.mrb[0].mxu0 }
  0xf6   :  { %v140_v22 = vpop.f32.mrb[1].mxu0  ;;  %v161_v23 = vmul.f32 %v3187_v21, %v158_v20 }
  0xf7   :  { %v3188_v24 = vpop.f32.mrb[2].mxu0  ;;  %v159_v25 = vmul.f32 %v158_v20, %v140_v22 }
  0xf8   :  { %v3485_v26 = vpack.c.bf16 %v3188_v24, %v3187_v21  ;;  %167 = vadd.xlane.f32.xlu1 %v161_v23  ;;  %v143_v27 = vpop.f32.mrb[3].mxu0  ;;  %v162_v29 = vmul.f32 %v3188_v24, %v158_v20 }
  0xf9   :  { %v3482_v28 = vpack.c.bf16 %v143_v27, %v140_v22  ;;  %163 = vadd.xlane.f32.xlu0 %v159_v25  ;;  %v160_v30 = vmul.f32 %v158_v20, %v143_v27 }
  0xfb   :  { %3483 = vmatpush3.bf16.xpose.msra.mxu1 %v3482_v28 }
  0xfc   :  { %169 = vadd.xlane.f32.xlu1 %v162_v29  ;;  %3484 = vmatprep.subr.bf16.mxu1 %v3725_v14 }
  0xfd   :  { %165 = vadd.xlane.f32.xlu0 %v160_v30 }
 0x103   :  { %3486 = vmatpush3.bf16.xpose.msra.mxu1 %v3485_v26 }
 0x104   :  { %3200 = vmatprep.subr.bf16.mxu1 %v3482_v28 }
 0x10a   :  { %3198 = vmatmul.mubr.f32.vlgmr.msra.gmra.mrb[0].mxu1 %v172_v31 }
 0x10b   :  { %3201 = vmatpush3.bf16.msra.mxu1 %v3482_v28 }
 0x10c   :  { %3202 = vmatprep.subr.bf16.mxu1 %v3485_v26 }
 0x10f   :  { %3203 = vmatpush3.bf16.msra.mxu1 %v3485_v26 }
 0x110   :  { %3208 = vmatprep.subr.bf16.mxu1 %v3541_v32 }
 0x185   :  { %v168_v35 = vpop.xlane.xlu1 %167 }
 0x186   :  { %v164_v36 = vpop.xlane.xlu0 %163 }
 0x189   :  { %v170_v46 = vpop.xlane.xlu1 %169 }
 0x18a   :  { %v166_v47 = vpop.xlane.xlu0 %165 }
 0x1dd   :  { %v240_v41 = vpop.f32.mrb[0].mxu1 }
 0x1de   :  { %v247_v44 = vrot.slane %v240_v41, %v3796_v18  ;;  %v3199_v45 = vpop.f32.mrb[1].mxu1 }
 0x1e0   :  { %v248_v48 = vadd.f32 %v247_v44, %v164_v36  ;;  %v249_v49 = vadd.f32 %v247_v44, %v166_v47  ;;  %v250_v50 = vadd.f32 %v247_v44, %v168_v35  ;;  %v251_v51 = vadd.f32 %v247_v44, %v170_v46 }
 0x1e2   :  { %v252_v52 = vmul.f32 0.2, %v248_v48  ;;  %v253_v53 = vmul.f32 0.2, %v249_v49  ;;  %v254_v54 = vmul.f32 0.2, %v250_v50 }
 0x1e3   :  { %v255_v58 = vmul.f32 0.2, %v251_v51 }
 0x1e4   :  { %v256_v59 = vmax.f32 %v248_v48, %v252_v52  ;;  %v257_v60 = vmax.f32 %v249_v49, %v253_v53  ;;  %v258_v61 = vmax.f32 %v250_v50, %v254_v54 }
 0x1e5   :  { %v259_v0 = vmax.f32 %v251_v51, %v255_v58 }
 0x1e6   :  { %v260_v1 = vadd.f32 %v256_v59, %v3807_v56  ;;  %v261_v2 = vadd.f32 %v257_v60, %v3809_v57  ;;  %v262_v5 = vadd.f32 %v258_v61, %v3811_v62  ;;  %v3542_v61 = vld [vmem:[%s4215_s2 + $0x48] sm:$0xff]  }
 0x1e7   :  { %v263_v6 = vadd.f32 %v259_v0, %v3813_v63  ;;  %v3543_v0 = vld [vmem:[%s4215_s2 + $0x50] sm:$0xff]  }
 0x1e8   :  { %v265_v3 = vsel %vm264_vm5, %v260_v1, -inf  ;;  %v268_v4 = vsel %vm264_vm5, %v261_v2, -inf  ;;  %v271_v7 = vsel %vm264_vm5, %v262_v5, -inf }
 0x1e9   :  { %266 = vmax.xlane.f32.xlu0 %v265_v3  ;;  %269 = vmax.xlane.f32.xlu1 %v268_v4  ;;  %v274_v8 = vsel %vm264_vm5, %v263_v6, -inf  ;;  %v3546_v3 = vld [vmem:[%s4215_s2 + $0x68] sm:$0xff]   ;;  %v3547_v4 = vld [vmem:[%s4215_s2 + $0x70] sm:$0xff]  }
 0x1ed   :  { %272 = vmax.xlane.f32.xlu0 %v271_v7  ;;  %275 = vmax.xlane.f32.xlu1 %v274_v8 }
 0x276   :  { %v270_v9 = vpop.xlane.xlu1 %269  ;;  %v267_v10 = vpop.xlane.xlu0 %266 }
 0x277   :  { %v278_v11 = vsub.f32 %v261_v2, %v270_v9  ;;  %v277_v12 = vsub.f32 %v260_v1, %v267_v10  ;;  %v3544_v1 = vld [vmem:[%s4215_s2 + $0x58] sm:$0xff]   ;;  %v3545_v2 = vld [vmem:[%s4215_s2 + $0x60] sm:$0xff]  }
 0x279   :  { %v283_v13 = vmul.f32 1.442695, %v278_v11  ;;  %v281_v16 = vmul.f32 1.442695, %v277_v12  ;;  %v2828_v12 = vld [vmem:[%s4217_s3 + $0x2] sm:$0x3] }
 0x27a   :  { %v276_v17 = vpop.xlane.xlu1 %275  ;;  %v273_v19 = vpop.xlane.xlu0 %272 }
 0x27b   :  { %3597 = vpow2.f32 %v283_v13  ;;  %v280_v20 = vsub.f32 %v263_v6, %v276_v17  ;;  %v279_v21 = vsub.f32 %v262_v5, %v273_v19  ;;  %v3548_v5 = vld [vmem:[%s4215_s2 + $0x78] sm:$0xff]   ;;  %v505_v13 = vrot.slane %v2828_v12, %v3796_v18 }
 0x27c   :  { %3599 = vpow2.f32 %v281_v16 }
 0x27d   :  { %v287_v22 = vmul.f32 1.442695, %v280_v20  ;;  %v285_v23 = vmul.f32 1.442695, %v279_v21 }
 0x27f   :  { %3601 = vpow2.f32 %v287_v22 }
 0x280   :  { %3603 = vpow2.f32 %v285_v23 }
 0x285   :  { %v3598_v24 = vpop.eup %3597 }
 0x286   :  { %v3600_v25 = vpop.eup %3599  ;;  %v292_v26 = vsel %vm264_vm5, %v3598_v24, 0.0 }
 0x287   :  { %293 = vadd.xlane.f32.xlu1 %v292_v26  ;;  %v289_v27 = vsel %vm264_vm5, %v3600_v25, 0.0 }
 0x288   :  { %290 = vadd.xlane.f32.xlu0 %v289_v27  ;;  %v519_v27 = vrot.slane %v2828_v12, 1 }
 0x289   :  { %v3602_v28 = vpop.eup %3601 }
 0x28a   :  { %v3604_v29 = vpop.eup %3603  ;;  %v298_v30 = vsel %vm264_vm5, %v3602_v28, 0.0 }
 0x28b   :  { %299 = vadd.xlane.f32.xlu1 %v298_v30  ;;  %v295_v31 = vsel %vm264_vm5, %v3604_v29, 0.0 }
 0x28c   :  { %296 = vadd.xlane.f32.xlu0 %v295_v31 }
 0x314   :  { %v294_v33 = vpop.xlane.xlu1 %293 }
 0x315   :  { %3605 = vrcp.f32 %v294_v33  ;;  %v291_v34 = vpop.xlane.xlu0 %290 }
 0x316   :  { %3607 = vrcp.f32 %v291_v34 }
 0x318   :  { %v300_v35 = vpop.xlane.xlu1 %299 }
 0x319   :  { %3609 = vrcp.f32 %v300_v35  ;;  %v297_v36 = vpop.xlane.xlu0 %296 }
 0x31a   :  { %3611 = vrcp.f32 %v297_v36 }
 0x31f   :  { %v3606_v37 = vpop.eup %3605 }
 0x320   :  { %v3608_v38 = vpop.eup %3607  ;;  %v306_v39 = vmul.f32 %v3606_v37, %v294_v33 }
 0x321   :  { %v305_v40 = vmul.f32 %v3608_v38, %v291_v34 }
 0x322   :  { %v310_v41 = vsub.f32 2.0, %v306_v39 }
 0x323   :  { %v3610_v42 = vpop.eup %3609  ;;  %v309_v43 = vsub.f32 2.0, %v305_v40 }
 0x324   :  { %v3612_v44 = vpop.eup %3611  ;;  %v314_v45 = vmul.f32 %v3606_v37, %v310_v41  ;;  %v308_v46 = vmul.f32 %v3610_v42, %v300_v35 }
 0x325   :  { %v313_v47 = vmul.f32 %v3608_v38, %v309_v43  ;;  %v307_v48 = vmul.f32 %v3612_v44, %v297_v36 }
 0x326   :  { %v318_v49 = vmul.f32 %v3598_v24, %v314_v45  ;;  %v312_v50 = vsub.f32 2.0, %v308_v46 }
 0x327   :  { %v317_v51 = vmul.f32 %v3600_v25, %v313_v47  ;;  %v311_v52 = vsub.f32 2.0, %v307_v48 }
 0x328   :  { %v316_v53 = vmul.f32 %v3610_v42, %v312_v50 }
 0x329   :  { %v315_v54 = vmul.f32 %v3612_v44, %v311_v52  ;;  %v321_v55 = vpack.c.bf16 %v318_v49, %v317_v51 }
 0x32a   :  { %v320_v58 = vmul.f32 %v3602_v28, %v316_v53 }
 0x32b   :  { %v319_v59 = vmul.f32 %v3604_v29, %v315_v54  ;;  %3204 = vmatprep.mubr.msk.bf16.mxu1 %vm264_vm5, %v321_v55 }
 0x32d   :  { %v322_v60 = vpack.c.bf16 %v320_v58, %v319_v59 }
 0x32f   :  { %3205 = vmatmul.mubr.msk.bf16.vlgmr.msra.gmra.mrb[4].mxu1 %vm264_vm5, %v322_v60 }
 0x330   :  { %3209 = vmatpush3.bf16.msra.mxu1 %v3541_v32 }
 0x331   :  { %3210 = vmatprep.subr.bf16.mxu1 %v3542_v61 }
 0x334   :  { %3211 = vmatpush3.bf16.msra.mxu1 %v3542_v61 }
 0x335   :  { %3212 = vmatprep.subr.bf16.mxu1 %v3543_v0 }
 0x338   :  { %3213 = vmatpush3.bf16.msra.mxu1 %v3543_v0 }
 0x339   :  { %3214 = vmatprep.subr.bf16.mxu1 %v3544_v1 }
 0x33c   :  { %3215 = vmatpush3.bf16.msra.mxu1 %v3544_v1 }
 0x33d   :  { %3216 = vmatprep.subr.bf16.mxu1 %v3545_v2 }
 0x340   :  { %3217 = vmatpush3.bf16.msra.mxu1 %v3545_v2 }
 0x341   :  { %3218 = vmatprep.subr.bf16.mxu1 %v3546_v3 }
 0x344   :  { %3219 = vmatpush3.bf16.msra.mxu1 %v3546_v3 }
 0x345   :  { %3220 = vmatprep.subr.bf16.mxu1 %v3547_v4 }
 0x348   :  { %3221 = vmatpush3.bf16.msra.mxu1 %v3547_v4 }
 0x349   :  { %3222 = vmatprep.subr.bf16.mxu1 %v3548_v5 }
 0x34c   :  { %3223 = vmatpush3.bf16.msra.mxu1 %v3548_v5 }
 0x34d   :  { %3493 = vmatprep.subr.bf16.mxu1 %v3725_v14 }
 0x402   :  { %v3206_v6 = vpop.f32.mrb[4].mxu1 }
 0x403   :  { %382 = vst [vmem:[%s4219_s4 + $0x10] sm:$0xff] %v3206_v6  ;;  %v365_v7 = vpop.f32.mrb[5].mxu1 }
 0x404   :  { %380 = vst [vmem:[%s4219_s4] sm:$0xff] %v365_v7  ;;  %v3207_v8 = vpop.f32.mrb[6].mxu1 }
 0x405   :  { %383 = vst [vmem:[%s4219_s4 + $0x18] sm:$0xff] %v3207_v8  ;;  %v404_v9 = vpack.c.bf16 %v3207_v8, %v3206_v6  ;;  %v368_v10 = vpop.f32.mrb[7].mxu1 }
 0x406   :  { %381 = vst [vmem:[%s4219_s4 + $0x8] sm:$0xff] %v368_v10  ;;  %v403_v11 = vpack.c.bf16 %v368_v10, %v365_v7 }
 0x408   :  { %3224 = vmatprep.mubr.bf16.mxu1 %v403_v11 }
 0x409   :  { %3225 = vmatmul.mubr.bf16.vlgmr.msra.gmra.mrb[8].mxu1 %v404_v9 }
 0x40a   :  { %3275 = vmatprep.mubr.msk.f32.mxu1 %vm3726_vm0, %v3727_v15 }
 0x4dc   :  { %v3226_v16 = vpop.f32.mrb[8].mxu1 }
 0x4dd   :  { %v487_v17 = vpop.f32.mrb[9].mxu1  ;;  %v508_v25 = vmul.f32 %v3226_v16, %v505_v13 }
 0x4de   :  { %v3227_v19 = vpop.f32.mrb[10].mxu1  ;;  %v506_v20 = vmul.f32 %v505_v13, %v487_v17 }
 0x4df   :  { %v3491_v21 = vpack.c.bf16 %v3227_v19, %v3226_v16  ;;  %v490_v22 = vpop.f32.mrb[11].mxu1  ;;  %v509_v26 = vmul.f32 %v3227_v19, %v505_v13 }
 0x4e0   :  { %v3488_v23 = vpack.c.bf16 %v490_v22, %v487_v17  ;;  %510 = vadd.xlane.f32.xlu0 %v506_v20  ;;  %v507_v24 = vmul.f32 %v505_v13, %v490_v22  ;;  %v3549_v17 = vld [vmem:[%s4215_s2 + $0x80] sm:$0xff]  }
 0x4e2   :  { %3489 = vmatpush3.bf16.xpose.msra.mxu0 %v3488_v23  ;;  %512 = vadd.xlane.f32.xlu1 %v507_v24 }
 0x4e3   :  { %3490 = vmatprep.subr.bf16.mxu0 %v3725_v14 }
 0x4e4   :  { %514 = vadd.xlane.f32.xlu0 %v508_v25 }
 0x4e6   :  { %516 = vadd.xlane.f32.xlu1 %v509_v26 }
 0x4ea   :  { %3492 = vmatpush3.bf16.xpose.msra.mxu0 %v3491_v21 }
 0x4eb   :  { %3239 = vmatprep.subr.bf16.mxu0 %v3488_v23 }
 0x4f1   :  { %3237 = vmatmul.mubr.f32.vlgmr.msra.gmra.mrb[4].mxu0 %v519_v27 }
 0x4f2   :  { %3240 = vmatpush3.bf16.msra.mxu0 %v3488_v23 }
 0x4f3   :  { %3241 = vmatprep.subr.bf16.mxu0 %v3491_v21 }
 0x4f6   :  { %3242 = vmatpush3.bf16.msra.mxu0 %v3491_v21 }
 0x4f7   :  { %3247 = vmatprep.subr.bf16.mxu0 %v3549_v17 }
 0x56d   :  { %v511_v28 = vpop.xlane.xlu0 %510 }
 0x56f   :  { %v513_v29 = vpop.xlane.xlu1 %512 }
 0x571   :  { %v515_v33 = vpop.xlane.xlu0 %514 }
 0x573   :  { %v517_v34 = vpop.xlane.xlu1 %516 }
 0x5c4   :  { %v587_v30 = vpop.f32.mrb[4].mxu0 }
 0x5c5   :  { %v594_v31 = vrot.slane %v587_v30, %v3796_v18  ;;  %v3238_v32 = vpop.f32.mrb[5].mxu0 }
 0x5c7   :  { %v595_v35 = vadd.f32 %v594_v31, %v511_v28  ;;  %v596_v36 = vadd.f32 %v594_v31, %v513_v29  ;;  %v597_v37 = vadd.f32 %v594_v31, %v515_v33  ;;  %v598_v38 = vadd.f32 %v594_v31, %v517_v34 }
 0x5c9   :  { %v599_v39 = vmul.f32 0.2, %v595_v35  ;;  %v600_v40 = vmul.f32 0.2, %v596_v36  ;;  %v601_v41 = vmul.f32 0.2, %v597_v37 }
 0x5ca   :  { %v602_v42 = vmul.f32 0.2, %v598_v38 }
 0x5cb   :  { %v603_v43 = vmax.f32 %v595_v35, %v599_v39  ;;  %v604_v44 = vmax.f32 %v596_v36, %v600_v40  ;;  %v605_v45 = vmax.f32 %v597_v37, %v601_v41 }
 0x5cc   :  { %v606_v46 = vmax.f32 %v598_v38, %v602_v42 }
 0x5cd   :  { %v607_v47 = vadd.f32 %v603_v43, %v3807_v56  ;;  %v608_v48 = vadd.f32 %v604_v44, %v3809_v57  ;;  %v609_v51 = vadd.f32 %v605_v45, %v3811_v62  ;;  %v3550_v45 = vld [vmem:[%s4215_s2 + $0x88] sm:$0xff]  }
 0x5ce   :  { %v610_v52 = vadd.f32 %v606_v46, %v3813_v63  ;;  %v3551_v46 = vld [vmem:[%s4215_s2 + $0x90] sm:$0xff]  }
 0x5cf   :  { %v611_v49 = vsel %vm264_vm5, %v607_v47, -inf  ;;  %v614_v50 = vsel %vm264_vm5, %v608_v48, -inf  ;;  %v617_v53 = vsel %vm264_vm5, %v609_v51, -inf }
 0x5d0   :  { %612 = vmax.xlane.f32.xlu0 %v611_v49  ;;  %615 = vmax.xlane.f32.xlu1 %v614_v50  ;;  %v620_v54 = vsel %vm264_vm5, %v610_v52, -inf  ;;  %v3554_v49 = vld [vmem:[%s4215_s2 + $0xa8] sm:$0xff]   ;;  %v3555_v50 = vld [vmem:[%s4215_s2 + $0xb0] sm:$0xff]  }
 0x5d4   :  { %618 = vmax.xlane.f32.xlu0 %v617_v53  ;;  %621 = vmax.xlane.f32.xlu1 %v620_v54 }
 0x65d   :  { %v613_v55 = vpop.xlane.xlu0 %612  ;;  %v616_v58 = vpop.xlane.xlu1 %615 }
 0x65e   :  { %v623_v59 = vsub.f32 %v607_v47, %v613_v55  ;;  %v624_v60 = vsub.f32 %v608_v48, %v616_v58  ;;  %v3552_v47 = vld [vmem:[%s4215_s2 + $0x98] sm:$0xff]   ;;  %v3553_v48 = vld [vmem:[%s4215_s2 + $0xa0] sm:$0xff]  }
 0x660   :  { %v627_v61 = vmul.f32 1.442695, %v623_v59  ;;  %v629_v0 = vmul.f32 1.442695, %v624_v60  ;;  %v2859_v60 = vld [vmem:[%s4217_s3 + $0x4] sm:$0x3] }
 0x661   :  { %v619_v1 = vpop.xlane.xlu0 %618  ;;  %v622_v2 = vpop.xlane.xlu1 %621 }
 0x662   :  { %3613 = vpow2.f32 %v627_v61  ;;  %v625_v3 = vsub.f32 %v609_v51, %v619_v1  ;;  %v626_v4 = vsub.f32 %v610_v52, %v622_v2  ;;  %v3556_v51 = vld [vmem:[%s4215_s2 + $0xb8] sm:$0xff]   ;;  %v852_v61 = vrot.slane %v2859_v60, %v3796_v18 }
 0x663   :  { %3615 = vpow2.f32 %v629_v0 }
 0x664   :  { %v631_v5 = vmul.f32 1.442695, %v625_v3  ;;  %v633_v6 = vmul.f32 1.442695, %v626_v4 }
 0x666   :  { %3617 = vpow2.f32 %v631_v5 }
 0x667   :  { %3619 = vpow2.f32 %v633_v6 }
 0x66c   :  { %v3614_v7 = vpop.eup %3613 }
 0x66d   :  { %v3616_v8 = vpop.eup %3615  ;;  %v635_v9 = vsel %vm264_vm5, %v3614_v7, 0.0 }
 0x66e   :  { %636 = vadd.xlane.f32.xlu0 %v635_v9  ;;  %v638_v10 = vsel %vm264_vm5, %v3616_v8, 0.0 }
 0x66f   :  { %639 = vadd.xlane.f32.xlu1 %v638_v10  ;;  %v866_v10 = vrot.slane %v2859_v60, 1 }
 0x670   :  { %v3618_v11 = vpop.eup %3617 }
 0x671   :  { %v3620_v12 = vpop.eup %3619  ;;  %v641_v13 = vsel %vm264_vm5, %v3618_v11, 0.0 }
 0x672   :  { %642 = vadd.xlane.f32.xlu0 %v641_v13  ;;  %v644_v16 = vsel %vm264_vm5, %v3620_v12, 0.0 }
 0x673   :  { %645 = vadd.xlane.f32.xlu1 %v644_v16 }
 0x6fb   :  { %v637_v19 = vpop.xlane.xlu0 %636 }
 0x6fc   :  { %3621 = vrcp.f32 %v637_v19  ;;  %v640_v20 = vpop.xlane.xlu1 %639 }
 0x6fd   :  { %3623 = vrcp.f32 %v640_v20 }
 0x6ff   :  { %v643_v21 = vpop.xlane.xlu0 %642 }
 0x700   :  { %3625 = vrcp.f32 %v643_v21  ;;  %v646_v22 = vpop.xlane.xlu1 %645 }
 0x701   :  { %3627 = vrcp.f32 %v646_v22 }
 0x706   :  { %v3622_v23 = vpop.eup %3621 }
 0x707   :  { %v3624_v24 = vpop.eup %3623  ;;  %v651_v25 = vmul.f32 %v3622_v23, %v637_v19 }
 0x708   :  { %v652_v26 = vmul.f32 %v3624_v24, %v640_v20 }
 0x709   :  { %v655_v27 = vsub.f32 2.0, %v651_v25 }
 0x70a   :  { %v3626_v28 = vpop.eup %3625  ;;  %v656_v29 = vsub.f32 2.0, %v652_v26 }
 0x70b   :  { %v3628_v30 = vpop.eup %3627  ;;  %v659_v31 = vmul.f32 %v3622_v23, %v655_v27  ;;  %v653_v32 = vmul.f32 %v3626_v28, %v643_v21 }
 0x70c   :  { %v660_v33 = vmul.f32 %v3624_v24, %v656_v29  ;;  %v654_v34 = vmul.f32 %v3628_v30, %v646_v22 }
 0x70d   :  { %v663_v35 = vmul.f32 %v3614_v7, %v659_v31  ;;  %v657_v36 = vsub.f32 2.0, %v653_v32 }
 0x70e   :  { %v664_v37 = vmul.f32 %v3616_v8, %v660_v33  ;;  %v658_v38 = vsub.f32 2.0, %v654_v34 }
 0x70f   :  { %v661_v39 = vmul.f32 %v3626_v28, %v657_v36 }
 0x710   :  { %v662_v40 = vmul.f32 %v3628_v30, %v658_v38  ;;  %v667_v41 = vpack.c.bf16 %v664_v37, %v663_v35 }
 0x711   :  { %v665_v42 = vmul.f32 %v3618_v11, %v661_v39 }
 0x712   :  { %v666_v43 = vmul.f32 %v3620_v12, %v662_v40  ;;  %3243 = vmatprep.mubr.msk.bf16.mxu0 %vm264_vm5, %v667_v41 }
 0x714   :  { %v668_v44 = vpack.c.bf16 %v666_v43, %v665_v42 }
 0x716   :  { %3244 = vmatmul.mubr.msk.bf16.vlgmr.msra.gmra.mrb[8].mxu0 %vm264_vm5, %v668_v44 }
 0x717   :  { %3248 = vmatpush3.bf16.msra.mxu0 %v3549_v17 }
 0x718   :  { %3249 = vmatprep.subr.bf16.mxu0 %v3550_v45 }
 0x71b   :  { %3250 = vmatpush3.bf16.msra.mxu0 %v3550_v45 }
 0x71c   :  { %3251 = vmatprep.subr.bf16.mxu0 %v3551_v46 }
 0x71f   :  { %3252 = vmatpush3.bf16.msra.mxu0 %v3551_v46 }
 0x720   :  { %3253 = vmatprep.subr.bf16.mxu0 %v3552_v47 }
 0x723   :  { %3254 = vmatpush3.bf16.msra.mxu0 %v3552_v47 }
 0x724   :  { %3255 = vmatprep.subr.bf16.mxu0 %v3553_v48 }
 0x727   :  { %3256 = vmatpush3.bf16.msra.mxu0 %v3553_v48 }
 0x728   :  { %3257 = vmatprep.subr.bf16.mxu0 %v3554_v49 }
 0x72b   :  { %3258 = vmatpush3.bf16.msra.mxu0 %v3554_v49 }
 0x72c   :  { %3259 = vmatprep.subr.bf16.mxu0 %v3555_v50 }
 0x72f   :  { %3260 = vmatpush3.bf16.msra.mxu0 %v3555_v50 }
 0x730   :  { %3261 = vmatprep.subr.bf16.mxu0 %v3556_v51 }
 0x733   :  { %3262 = vmatpush3.bf16.msra.mxu0 %v3556_v51 }
 0x734   :  { %3499 = vmatprep.subr.bf16.mxu0 %v3725_v14 }
 0x7e9   :  { %v3245_v52 = vpop.f32.mrb[8].mxu0 }
 0x7ea   :  { %2841 = vst [vmem:[%s4219_s4 + $0x30] sm:$0xff] %v3245_v52  ;;  %v711_v53 = vpop.f32.mrb[9].mxu0 }
 0x7eb   :  { %2839 = vst [vmem:[%s4219_s4 + $0x20] sm:$0xff] %v711_v53  ;;  %v3246_v54 = vpop.f32.mrb[10].mxu0 }
 0x7ec   :  { %2842 = vst [vmem:[%s4219_s4 + $0x38] sm:$0xff] %v3246_v54  ;;  %v751_v55 = vpack.c.bf16 %v3246_v54, %v3245_v52  ;;  %v714_v58 = vpop.f32.mrb[11].mxu0 }
 0x7ed   :  { %2840 = vst [vmem:[%s4219_s4 + $0x28] sm:$0xff] %v714_v58  ;;  %v750_v59 = vpack.c.bf16 %v714_v58, %v711_v53 }
 0x7ef   :  { %3263 = vmatprep.mubr.bf16.mxu0 %v750_v59 }
 0x7f0   :  { %3264 = vmatmul.mubr.bf16.vlgmr.msra.gmra.mrb[12].mxu0 %v751_v55 }
 0x7f1   :  { %3314 = vmatprep.mubr.msk.f32.mxu0 %vm3726_vm0, %v3727_v15 }
 0x8c3   :  { %v3265_v0 = vpop.f32.mrb[12].mxu0 }
 0x8c4   :  { %v834_v1 = vpop.f32.mrb[13].mxu0  ;;  %v855_v8 = vmul.f32 %v3265_v0, %v852_v61 }
 0x8c5   :  { %v3266_v2 = vpop.f32.mrb[14].mxu0  ;;  %v853_v3 = vmul.f32 %v852_v61, %v834_v1 }
 0x8c6   :  { %v3497_v4 = vpack.c.bf16 %v3266_v2, %v3265_v0  ;;  %v837_v5 = vpop.f32.mrb[15].mxu0  ;;  %v856_v9 = vmul.f32 %v3266_v2, %v852_v61 }
 0x8c7   :  { %v3494_v6 = vpack.c.bf16 %v837_v5, %v834_v1  ;;  %857 = vadd.xlane.f32.xlu0 %v853_v3  ;;  %v854_v7 = vmul.f32 %v852_v61, %v837_v5  ;;  %v3557_v1 = vld [vmem:[%s4215_s2 + $0xc0] sm:$0xff]  }
 0x8c9   :  { %3495 = vmatpush3.bf16.xpose.msra.mxu1 %v3494_v6  ;;  %859 = vadd.xlane.f32.xlu1 %v854_v7 }
 0x8ca   :  { %3496 = vmatprep.subr.bf16.mxu1 %v3725_v14 }
 0x8cb   :  { %861 = vadd.xlane.f32.xlu0 %v855_v8 }
 0x8cd   :  { %863 = vadd.xlane.f32.xlu1 %v856_v9 }
 0x8d1   :  { %3498 = vmatpush3.bf16.xpose.msra.mxu1 %v3497_v4 }
 0x8d2   :  { %3278 = vmatprep.subr.bf16.mxu1 %v3494_v6 }
 0x8d8   :  { %3276 = vmatmul.mubr.f32.vlgmr.msra.gmra.mrb[2].mxu1 %v866_v10 }
 0x8d9   :  { %3279 = vmatpush3.bf16.msra.mxu1 %v3494_v6 }
 0x8da   :  { %3280 = vmatprep.subr.bf16.mxu1 %v3497_v4 }
 0x8dd   :  { %3281 = vmatpush3.bf16.msra.mxu1 %v3497_v4 }
 0x8de   :  { %3286 = vmatprep.subr.bf16.mxu1 %v3557_v1 }
 0x954   :  { %v858_v11 = vpop.xlane.xlu0 %857 }
 0x956   :  { %v860_v12 = vpop.xlane.xlu1 %859 }
 0x958   :  { %v862_v19 = vpop.xlane.xlu0 %861 }
 0x95a   :  { %v864_v20 = vpop.xlane.xlu1 %863 }
 0x9ab   :  { %v934_v13 = vpop.f32.mrb[2].mxu1 }
 0x9ac   :  { %v941_v16 = vrot.slane %v934_v13, %v3796_v18  ;;  %v3277_v17 = vpop.f32.mrb[3].mxu1 }
 0x9ae   :  { %v942_v21 = vadd.f32 %v941_v16, %v858_v11  ;;  %v943_v22 = vadd.f32 %v941_v16, %v860_v12  ;;  %v944_v23 = vadd.f32 %v941_v16, %v862_v19  ;;  %v945_v24 = vadd.f32 %v941_v16, %v864_v20 }
 0x9b0   :  { %v946_v25 = vmul.f32 0.2, %v942_v21  ;;  %v947_v26 = vmul.f32 0.2, %v943_v22  ;;  %v948_v27 = vmul.f32 0.2, %v944_v23 }
 0x9b1   :  { %v949_v28 = vmul.f32 0.2, %v945_v24 }
 0x9b2   :  { %v950_v29 = vmax.f32 %v942_v21, %v946_v25  ;;  %v951_v30 = vmax.f32 %v943_v22, %v947_v26  ;;  %v952_v31 = vmax.f32 %v944_v23, %v948_v27 }
 0x9b3   :  { %v953_v32 = vmax.f32 %v945_v24, %v949_v28 }
 0x9b4   :  { %v954_v33 = vadd.f32 %v950_v29, %v3807_v56  ;;  %v955_v34 = vadd.f32 %v951_v30, %v3809_v57  ;;  %v956_v37 = vadd.f32 %v952_v31, %v3811_v62  ;;  %v3558_v31 = vld [vmem:[%s4215_s2 + $0xc8] sm:$0xff]  }
 0x9b5   :  { %v957_v38 = vadd.f32 %v953_v32, %v3813_v63  ;;  %v3559_v32 = vld [vmem:[%s4215_s2 + $0xd0] sm:$0xff]  }
 0x9b6   :  { %v958_v35 = vsel %vm264_vm5, %v954_v33, -inf  ;;  %v961_v36 = vsel %vm264_vm5, %v955_v34, -inf  ;;  %v964_v39 = vsel %vm264_vm5, %v956_v37, -inf }
 0x9b7   :  { %959 = vmax.xlane.f32.xlu0 %v958_v35  ;;  %962 = vmax.xlane.f32.xlu1 %v961_v36  ;;  %v967_v40 = vsel %vm264_vm5, %v957_v38, -inf  ;;  %v3562_v35 = vld [vmem:[%s4215_s2 + $0xe8] sm:$0xff]   ;;  %v3563_v36 = vld [vmem:[%s4215_s2 + $0xf0] sm:$0xff]  }
 0x9bb   :  { %965 = vmax.xlane.f32.xlu0 %v964_v39  ;;  %968 = vmax.xlane.f32.xlu1 %v967_v40 }
 0xa44   :  { %v960_v41 = vpop.xlane.xlu0 %959  ;;  %v963_v42 = vpop.xlane.xlu1 %962 }
 0xa45   :  { %v970_v43 = vsub.f32 %v954_v33, %v960_v41  ;;  %v971_v44 = vsub.f32 %v955_v34, %v963_v42  ;;  %v3560_v33 = vld [vmem:[%s4215_s2 + $0xd8] sm:$0xff]   ;;  %v3561_v34 = vld [vmem:[%s4215_s2 + $0xe0] sm:$0xff]  }
 0xa47   :  { %v974_v45 = vmul.f32 1.442695, %v970_v43  ;;  %v976_v46 = vmul.f32 1.442695, %v971_v44  ;;  %v2890_v44 = vld [vmem:[%s4217_s3 + $0x6] sm:$0x3] }
 0xa48   :  { %v966_v47 = vpop.xlane.xlu0 %965  ;;  %v969_v48 = vpop.xlane.xlu1 %968 }
 0xa49   :  { %3629 = vpow2.f32 %v974_v45  ;;  %v972_v49 = vsub.f32 %v956_v37, %v966_v47  ;;  %v973_v50 = vsub.f32 %v957_v38, %v969_v48  ;;  %v3564_v37 = vld [vmem:[%s4215_s2 + $0xf8] sm:$0xff]   ;;  %v1199_v45 = vrot.slane %v2890_v44, %v3796_v18 }
 0xa4a   :  { %3631 = vpow2.f32 %v976_v46 }
 0xa4b   :  { %v978_v51 = vmul.f32 1.442695, %v972_v49  ;;  %v980_v52 = vmul.f32 1.442695, %v973_v50 }
 0xa4d   :  { %3633 = vpow2.f32 %v978_v51 }
 0xa4e   :  { %3635 = vpow2.f32 %v980_v52 }
 0xa53   :  { %v3630_v53 = vpop.eup %3629 }
 0xa54   :  { %v3632_v54 = vpop.eup %3631  ;;  %v982_v55 = vsel %vm264_vm5, %v3630_v53, 0.0 }
 0xa55   :  { %983 = vadd.xlane.f32.xlu0 %v982_v55  ;;  %v985_v58 = vsel %vm264_vm5, %v3632_v54, 0.0 }
 0xa56   :  { %986 = vadd.xlane.f32.xlu1 %v985_v58  ;;  %v1213_v58 = vrot.slane %v2890_v44, 1 }
 0xa57   :  { %v3634_v59 = vpop.eup %3633 }
 0xa58   :  { %v3636_v60 = vpop.eup %3635  ;;  %v988_v61 = vsel %vm264_vm5, %v3634_v59, 0.0 }
 0xa59   :  { %989 = vadd.xlane.f32.xlu0 %v988_v61  ;;  %v991_v0 = vsel %vm264_vm5, %v3636_v60, 0.0 }
 0xa5a   :  { %992 = vadd.xlane.f32.xlu1 %v991_v0 }
 0xae2   :  { %v984_v2 = vpop.xlane.xlu0 %983 }
 0xae3   :  { %3637 = vrcp.f32 %v984_v2  ;;  %v987_v3 = vpop.xlane.xlu1 %986 }
 0xae4   :  { %3639 = vrcp.f32 %v987_v3 }
 0xae6   :  { %v990_v4 = vpop.xlane.xlu0 %989 }
 0xae7   :  { %3641 = vrcp.f32 %v990_v4  ;;  %v993_v5 = vpop.xlane.xlu1 %992 }
 0xae8   :  { %3643 = vrcp.f32 %v993_v5 }
 0xaed   :  { %v3638_v6 = vpop.eup %3637 }
 0xaee   :  { %v3640_v7 = vpop.eup %3639  ;;  %v998_v8 = vmul.f32 %v3638_v6, %v984_v2 }
 0xaef   :  { %v999_v9 = vmul.f32 %v3640_v7, %v987_v3 }
 0xaf0   :  { %v1002_v10 = vsub.f32 2.0, %v998_v8 }
 0xaf1   :  { %v3642_v11 = vpop.eup %3641  ;;  %v1003_v12 = vsub.f32 2.0, %v999_v9 }
 0xaf2   :  { %v3644_v13 = vpop.eup %3643  ;;  %v1006_v16 = vmul.f32 %v3638_v6, %v1002_v10  ;;  %v1000_v17 = vmul.f32 %v3642_v11, %v990_v4 }
 0xaf3   :  { %v1007_v19 = vmul.f32 %v3640_v7, %v1003_v12  ;;  %v1001_v20 = vmul.f32 %v3644_v13, %v993_v5 }
 0xaf4   :  { %v1010_v21 = vmul.f32 %v3630_v53, %v1006_v16  ;;  %v1004_v22 = vsub.f32 2.0, %v1000_v17 }
 0xaf5   :  { %v1011_v23 = vmul.f32 %v3632_v54, %v1007_v19  ;;  %v1005_v24 = vsub.f32 2.0, %v1001_v20 }
 0xaf6   :  { %v1008_v25 = vmul.f32 %v3642_v11, %v1004_v22 }
 0xaf7   :  { %v1009_v26 = vmul.f32 %v3644_v13, %v1005_v24  ;;  %v1014_v27 = vpack.c.bf16 %v1011_v23, %v1010_v21 }
 0xaf8   :  { %v1012_v28 = vmul.f32 %v3634_v59, %v1008_v25 }
 0xaf9   :  { %v1013_v29 = vmul.f32 %v3636_v60, %v1009_v26  ;;  %3282 = vmatprep.mubr.msk.bf16.mxu1 %vm264_vm5, %v1014_v27 }
 0xafb   :  { %v1015_v30 = vpack.c.bf16 %v1013_v29, %v1012_v28 }
 0xafd   :  { %3283 = vmatmul.mubr.msk.bf16.vlgmr.msra.gmra.mrb[12].mxu1 %vm264_vm5, %v1015_v30 }
 0xafe   :  { %3287 = vmatpush3.bf16.msra.mxu1 %v3557_v1 }
 0xaff   :  { %3288 = vmatprep.subr.bf16.mxu1 %v3558_v31 }
 0xb02   :  { %3289 = vmatpush3.bf16.msra.mxu1 %v3558_v31 }
 0xb03   :  { %3290 = vmatprep.subr.bf16.mxu1 %v3559_v32 }
 0xb06   :  { %3291 = vmatpush3.bf16.msra.mxu1 %v3559_v32 }
 0xb07   :  { %3292 = vmatprep.subr.bf16.mxu1 %v3560_v33 }
 0xb0a   :  { %3293 = vmatpush3.bf16.msra.mxu1 %v3560_v33 }
 0xb0b   :  { %3294 = vmatprep.subr.bf16.mxu1 %v3561_v34 }
 0xb0e   :  { %3295 = vmatpush3.bf16.msra.mxu1 %v3561_v34 }
 0xb0f   :  { %3296 = vmatprep.subr.bf16.mxu1 %v3562_v35 }
 0xb12   :  { %3297 = vmatpush3.bf16.msra.mxu1 %v3562_v35 }
 0xb13   :  { %3298 = vmatprep.subr.bf16.mxu1 %v3563_v36 }
 0xb16   :  { %3299 = vmatpush3.bf16.msra.mxu1 %v3563_v36 }
 0xb17   :  { %3300 = vmatprep.subr.bf16.mxu1 %v3564_v37 }
 0xb1a   :  { %3301 = vmatpush3.bf16.msra.mxu1 %v3564_v37 }
 0xb1b   :  { %3505 = vmatprep.subr.bf16.mxu1 %v3725_v14 }
 0xbd0   :  { %v3284_v38 = vpop.f32.mrb[12].mxu1 }
 0xbd1   :  { %2872 = vst [vmem:[%s4219_s4 + $0x50] sm:$0xff] %v3284_v38  ;;  %v1058_v39 = vpop.f32.mrb[13].mxu1 }
 0xbd2   :  { %2870 = vst [vmem:[%s4219_s4 + $0x40] sm:$0xff] %v1058_v39  ;;  %v3285_v40 = vpop.f32.mrb[14].mxu1 }
 0xbd3   :  { %2873 = vst [vmem:[%s4219_s4 + $0x58] sm:$0xff] %v3285_v40  ;;  %v1098_v41 = vpack.c.bf16 %v3285_v40, %v3284_v38  ;;  %v1061_v42 = vpop.f32.mrb[15].mxu1 }
 0xbd4   :  { %2871 = vst [vmem:[%s4219_s4 + $0x48] sm:$0xff] %v1061_v42  ;;  %v1097_v43 = vpack.c.bf16 %v1061_v42, %v1058_v39 }
 0xbd6   :  { %3302 = vmatprep.mubr.bf16.mxu1 %v1097_v43 }
 0xbd7   :  { %3303 = vmatmul.mubr.bf16.vlgmr.msra.gmra.mrb[16].mxu1 %v1098_v41 }
 0xbd8   :  { %3353 = vmatprep.mubr.msk.f32.mxu1 %vm3726_vm0, %v3727_v15 }
 0xcaa   :  { %v3304_v46 = vpop.f32.mrb[16].mxu1 }
 0xcab   :  { %v1181_v47 = vpop.f32.mrb[17].mxu1  ;;  %v1202_v54 = vmul.f32 %v3304_v46, %v1199_v45 }
 0xcac   :  { %v3305_v48 = vpop.f32.mrb[18].mxu1  ;;  %v1200_v49 = vmul.f32 %v1199_v45, %v1181_v47 }
 0xcad   :  { %v3503_v50 = vpack.c.bf16 %v3305_v48, %v3304_v46  ;;  %v1184_v51 = vpop.f32.mrb[19].mxu1  ;;  %v1203_v55 = vmul.f32 %v3305_v48, %v1199_v45 }
 0xcae   :  { %v3500_v52 = vpack.c.bf16 %v1184_v51, %v1181_v47  ;;  %1204 = vadd.xlane.f32.xlu0 %v1200_v49  ;;  %v1201_v53 = vmul.f32 %v1199_v45, %v1184_v51  ;;  %v3565_v47 = vld [vmem:[%s4215_s2 + $0x100] sm:$0xff]  }
 0xcb0   :  { %3501 = vmatpush3.bf16.xpose.msra.mxu0 %v3500_v52  ;;  %1206 = vadd.xlane.f32.xlu1 %v1201_v53 }
 0xcb1   :  { %3502 = vmatprep.subr.bf16.mxu0 %v3725_v14 }
 0xcb2   :  { %1208 = vadd.xlane.f32.xlu0 %v1202_v54 }
 0xcb4   :  { %1210 = vadd.xlane.f32.xlu1 %v1203_v55 }
 0xcb8   :  { %3504 = vmatpush3.bf16.xpose.msra.mxu0 %v3503_v50 }
 0xcb9   :  { %3317 = vmatprep.subr.bf16.mxu0 %v3500_v52 }
 0xcbf   :  { %3315 = vmatmul.mubr.f32.vlgmr.msra.gmra.mrb[6].mxu0 %v1213_v58 }
 0xcc0   :  { %3318 = vmatpush3.bf16.msra.mxu0 %v3500_v52 }
 0xcc1   :  { %3319 = vmatprep.subr.bf16.mxu0 %v3503_v50 }
 0xcc4   :  { %3320 = vmatpush3.bf16.msra.mxu0 %v3503_v50 }
 0xcc5   :  { %3325 = vmatprep.subr.bf16.mxu0 %v3565_v47 }
 0xd3b   :  { %v1205_v59 = vpop.xlane.xlu0 %1204 }
 0xd3d   :  { %v1207_v60 = vpop.xlane.xlu1 %1206 }
 0xd3f   :  { %v1209_v2 = vpop.xlane.xlu0 %1208 }
 0xd41   :  { %v1211_v3 = vpop.xlane.xlu1 %1210 }
 0xd92   :  { %v1281_v61 = vpop.f32.mrb[6].mxu0 }
 0xd93   :  { %v1288_v0 = vrot.slane %v1281_v61, %v3796_v18  ;;  %v3316_v1 = vpop.f32.mrb[7].mxu0 }
 0xd95   :  { %v1289_v4 = vadd.f32 %v1288_v0, %v1205_v59  ;;  %v1290_v5 = vadd.f32 %v1288_v0, %v1207_v60  ;;  %v1291_v6 = vadd.f32 %v1288_v0, %v1209_v2  ;;  %v1292_v7 = vadd.f32 %v1288_v0, %v1211_v3 }
 0xd97   :  { %v1293_v8 = vmul.f32 0.2, %v1289_v4  ;;  %v1294_v9 = vmul.f32 0.2, %v1290_v5  ;;  %v1295_v10 = vmul.f32 0.2, %v1291_v6 }
 0xd98   :  { %v1296_v11 = vmul.f32 0.2, %v1292_v7 }
 0xd99   :  { %v1297_v12 = vmax.f32 %v1289_v4, %v1293_v8  ;;  %v1298_v13 = vmax.f32 %v1290_v5, %v1294_v9  ;;  %v1299_v16 = vmax.f32 %v1291_v6, %v1295_v10 }
 0xd9a   :  { %v1300_v17 = vmax.f32 %v1292_v7, %v1296_v11 }
 0xd9b   :  { %v1301_v19 = vadd.f32 %v1297_v12, %v3807_v56  ;;  %v1302_v20 = vadd.f32 %v1298_v13, %v3809_v57  ;;  %v1303_v23 = vadd.f32 %v1299_v16, %v3811_v62  ;;  %v3566_v16 = vld [vmem:[%s4215_s2 + $0x108] sm:$0xff]  }
 0xd9c   :  { %v1304_v24 = vadd.f32 %v1300_v17, %v3813_v63  ;;  %v3567_v17 = vld [vmem:[%s4215_s2 + $0x110] sm:$0xff]  }
 0xd9d   :  { %v1305_v21 = vsel %vm264_vm5, %v1301_v19, -inf  ;;  %v1308_v22 = vsel %vm264_vm5, %v1302_v20, -inf  ;;  %v1311_v25 = vsel %vm264_vm5, %v1303_v23, -inf }
 0xd9e   :  { %1306 = vmax.xlane.f32.xlu0 %v1305_v21  ;;  %1309 = vmax.xlane.f32.xlu1 %v1308_v22  ;;  %v1314_v26 = vsel %vm264_vm5, %v1304_v24, -inf  ;;  %v3570_v21 = vld [vmem:[%s4215_s2 + $0x128] sm:$0xff]   ;;  %v3571_v22 = vld [vmem:[%s4215_s2 + $0x130] sm:$0xff]  }
 0xda2   :  { %1312 = vmax.xlane.f32.xlu0 %v1311_v25  ;;  %1315 = vmax.xlane.f32.xlu1 %v1314_v26 }
 0xe2b   :  { %v1307_v27 = vpop.xlane.xlu0 %1306  ;;  %v1310_v28 = vpop.xlane.xlu1 %1309 }
 0xe2c   :  { %v1317_v29 = vsub.f32 %v1301_v19, %v1307_v27  ;;  %v1318_v30 = vsub.f32 %v1302_v20, %v1310_v28  ;;  %v3568_v19 = vld [vmem:[%s4215_s2 + $0x118] sm:$0xff]   ;;  %v3569_v20 = vld [vmem:[%s4215_s2 + $0x120] sm:$0xff]  }
 0xe2e   :  { %v1321_v31 = vmul.f32 1.442695, %v1317_v29  ;;  %v1323_v32 = vmul.f32 1.442695, %v1318_v30  ;;  %v2921_v30 = vld [vmem:[%s4217_s3 + $0x8] sm:$0x3] }
 0xe2f   :  { %v1313_v33 = vpop.xlane.xlu0 %1312  ;;  %v1316_v34 = vpop.xlane.xlu1 %1315 }
 0xe30   :  { %3645 = vpow2.f32 %v1321_v31  ;;  %v1319_v35 = vsub.f32 %v1303_v23, %v1313_v33  ;;  %v1320_v36 = vsub.f32 %v1304_v24, %v1316_v34  ;;  %v3572_v23 = vld [vmem:[%s4215_s2 + $0x138] sm:$0xff]   ;;  %v1546_v31 = vrot.slane %v2921_v30, %v3796_v18 }
 0xe31   :  { %3647 = vpow2.f32 %v1323_v32 }
 0xe32   :  { %v1325_v37 = vmul.f32 1.442695, %v1319_v35  ;;  %v1327_v38 = vmul.f32 1.442695, %v1320_v36 }
 0xe34   :  { %3649 = vpow2.f32 %v1325_v37 }
 0xe35   :  { %3651 = vpow2.f32 %v1327_v38 }
 0xe3a   :  { %v3646_v39 = vpop.eup %3645 }
 0xe3b   :  { %v3648_v40 = vpop.eup %3647  ;;  %v1329_v41 = vsel %vm264_vm5, %v3646_v39, 0.0 }
 0xe3c   :  { %1330 = vadd.xlane.f32.xlu0 %v1329_v41  ;;  %v1332_v42 = vsel %vm264_vm5, %v3648_v40, 0.0 }
 0xe3d   :  { %1333 = vadd.xlane.f32.xlu1 %v1332_v42  ;;  %v1560_v42 = vrot.slane %v2921_v30, 1 }
 0xe3e   :  { %v3650_v43 = vpop.eup %3649 }
 0xe3f   :  { %v3652_v44 = vpop.eup %3651  ;;  %v1335_v45 = vsel %vm264_vm5, %v3650_v43, 0.0 }
 0xe40   :  { %1336 = vadd.xlane.f32.xlu0 %v1335_v45  ;;  %v1338_v46 = vsel %vm264_vm5, %v3652_v44, 0.0 }
 0xe41   :  { %1339 = vadd.xlane.f32.xlu1 %v1338_v46 }
 0xec9   :  { %v1331_v48 = vpop.xlane.xlu0 %1330 }
 0xeca   :  { %3653 = vrcp.f32 %v1331_v48  ;;  %v1334_v49 = vpop.xlane.xlu1 %1333 }
 0xecb   :  { %3655 = vrcp.f32 %v1334_v49 }
 0xecd   :  { %v1337_v50 = vpop.xlane.xlu0 %1336 }
 0xece   :  { %3657 = vrcp.f32 %v1337_v50  ;;  %v1340_v51 = vpop.xlane.xlu1 %1339 }
 0xecf   :  { %3659 = vrcp.f32 %v1340_v51 }
 0xed4   :  { %v3654_v52 = vpop.eup %3653 }
 0xed5   :  { %v3656_v53 = vpop.eup %3655  ;;  %v1345_v54 = vmul.f32 %v3654_v52, %v1331_v48 }
 0xed6   :  { %v1346_v55 = vmul.f32 %v3656_v53, %v1334_v49 }
 0xed7   :  { %v1349_v58 = vsub.f32 2.0, %v1345_v54 }
 0xed8   :  { %v3658_v59 = vpop.eup %3657  ;;  %v1350_v60 = vsub.f32 2.0, %v1346_v55 }
 0xed9   :  { %v3660_v61 = vpop.eup %3659  ;;  %v1353_v0 = vmul.f32 %v3654_v52, %v1349_v58  ;;  %v1347_v1 = vmul.f32 %v3658_v59, %v1337_v50 }
 0xeda   :  { %v1354_v2 = vmul.f32 %v3656_v53, %v1350_v60  ;;  %v1348_v3 = vmul.f32 %v3660_v61, %v1340_v51 }
 0xedb   :  { %v1357_v4 = vmul.f32 %v3646_v39, %v1353_v0  ;;  %v1351_v5 = vsub.f32 2.0, %v1347_v1 }
 0xedc   :  { %v1358_v6 = vmul.f32 %v3648_v40, %v1354_v2  ;;  %v1352_v7 = vsub.f32 2.0, %v1348_v3 }
 0xedd   :  { %v1355_v8 = vmul.f32 %v3658_v59, %v1351_v5 }
 0xede   :  { %v1356_v9 = vmul.f32 %v3660_v61, %v1352_v7  ;;  %v1361_v10 = vpack.c.bf16 %v1358_v6, %v1357_v4 }
 0xedf   :  { %v1359_v11 = vmul.f32 %v3650_v43, %v1355_v8 }
 0xee0   :  { %v1360_v12 = vmul.f32 %v3652_v44, %v1356_v9  ;;  %3321 = vmatprep.mubr.msk.bf16.mxu0 %vm264_vm5, %v1361_v10 }
 0xee2   :  { %v1362_v13 = vpack.c.bf16 %v1360_v12, %v1359_v11 }
 0xee4   :  { %3322 = vmatmul.mubr.msk.bf16.vlgmr.msra.gmra.mrb[16].mxu0 %vm264_vm5, %v1362_v13 }
 0xee5   :  { %3326 = vmatpush3.bf16.msra.mxu0 %v3565_v47 }
 0xee6   :  { %3327 = vmatprep.subr.bf16.mxu0 %v3566_v16 }
 0xee9   :  { %3328 = vmatpush3.bf16.msra.mxu0 %v3566_v16 }
 0xeea   :  { %3329 = vmatprep.subr.bf16.mxu0 %v3567_v17 }
 0xeed   :  { %3330 = vmatpush3.bf16.msra.mxu0 %v3567_v17 }
 0xeee   :  { %3331 = vmatprep.subr.bf16.mxu0 %v3568_v19 }
 0xef1   :  { %3332 = vmatpush3.bf16.msra.mxu0 %v3568_v19 }
 0xef2   :  { %3333 = vmatprep.subr.bf16.mxu0 %v3569_v20 }
 0xef5   :  { %3334 = vmatpush3.bf16.msra.mxu0 %v3569_v20 }
 0xef6   :  { %3335 = vmatprep.subr.bf16.mxu0 %v3570_v21 }
 0xef9   :  { %3336 = vmatpush3.bf16.msra.mxu0 %v3570_v21 }
 0xefa   :  { %3337 = vmatprep.subr.bf16.mxu0 %v3571_v22 }
 0xefd   :  { %3338 = vmatpush3.bf16.msra.mxu0 %v3571_v22 }
 0xefe   :  { %3339 = vmatprep.subr.bf16.mxu0 %v3572_v23 }
 0xf01   :  { %3340 = vmatpush3.bf16.msra.mxu0 %v3572_v23 }
 0xf02   :  { %3511 = vmatprep.subr.bf16.mxu0 %v3725_v14 }
 0xfb7   :  { %v3323_v24 = vpop.f32.mrb[16].mxu0 }
 0xfb8   :  { %2903 = vst [vmem:[%s4219_s4 + $0x70] sm:$0xff] %v3323_v24  ;;  %v1405_v25 = vpop.f32.mrb[17].mxu0 }
 0xfb9   :  { %2901 = vst [vmem:[%s4219_s4 + $0x60] sm:$0xff] %v1405_v25  ;;  %v3324_v26 = vpop.f32.mrb[18].mxu0 }
 0xfba   :  { %2904 = vst [vmem:[%s4219_s4 + $0x78] sm:$0xff] %v3324_v26  ;;  %v1445_v27 = vpack.c.bf16 %v3324_v26, %v3323_v24  ;;  %v1408_v28 = vpop.f32.mrb[19].mxu0 }
 0xfbb   :  { %2902 = vst [vmem:[%s4219_s4 + $0x68] sm:$0xff] %v1408_v28  ;;  %v1444_v29 = vpack.c.bf16 %v1408_v28, %v1405_v25 }
 0xfbd   :  { %3341 = vmatprep.mubr.bf16.mxu0 %v1444_v29 }
 0xfbe   :  { %3342 = vmatmul.mubr.bf16.vlgmr.msra.gmra.mrb[20].mxu0 %v1445_v27 }
 0xfbf   :  { %3392 = vmatprep.mubr.msk.f32.mxu0 %vm3726_vm0, %v3727_v15 }
0x1091   :  { %v3343_v32 = vpop.f32.mrb[20].mxu0 }
0x1092   :  { %v1528_v33 = vpop.f32.mrb[21].mxu0  ;;  %v1549_v40 = vmul.f32 %v3343_v32, %v1546_v31 }
0x1093   :  { %v3344_v34 = vpop.f32.mrb[22].mxu0  ;;  %v1547_v35 = vmul.f32 %v1546_v31, %v1528_v33 }
0x1094   :  { %v3509_v36 = vpack.c.bf16 %v3344_v34, %v3343_v32  ;;  %v1531_v37 = vpop.f32.mrb[23].mxu0  ;;  %v1550_v41 = vmul.f32 %v3344_v34, %v1546_v31 }
0x1095   :  { %v3506_v38 = vpack.c.bf16 %v1531_v37, %v1528_v33  ;;  %1551 = vadd.xlane.f32.xlu0 %v1547_v35  ;;  %v1548_v39 = vmul.f32 %v1546_v31, %v1531_v37  ;;  %v3573_v33 = vld [vmem:[%s4215_s2 + $0x140] sm:$0xff]  }
0x1097   :  { %3507 = vmatpush3.bf16.xpose.msra.mxu1 %v3506_v38  ;;  %1553 = vadd.xlane.f32.xlu1 %v1548_v39 }
0x1098   :  { %3508 = vmatprep.subr.bf16.mxu1 %v3725_v14 }
0x1099   :  { %1555 = vadd.xlane.f32.xlu0 %v1549_v40 }
0x109b   :  { %1557 = vadd.xlane.f32.xlu1 %v1550_v41 }
0x109f   :  { %3510 = vmatpush3.bf16.xpose.msra.mxu1 %v3509_v36 }
0x10a0   :  { %3356 = vmatprep.subr.bf16.mxu1 %v3506_v38 }
0x10a6   :  { %3354 = vmatmul.mubr.f32.vlgmr.msra.gmra.mrb[20].mxu1 %v1560_v42 }
0x10a7   :  { %3357 = vmatpush3.bf16.msra.mxu1 %v3506_v38 }
0x10a8   :  { %3358 = vmatprep.subr.bf16.mxu1 %v3509_v36 }
0x10ab   :  { %3359 = vmatpush3.bf16.msra.mxu1 %v3509_v36 }
0x10ac   :  { %3364 = vmatprep.subr.bf16.mxu1 %v3573_v33 }
0x1122   :  { %v1552_v43 = vpop.xlane.xlu0 %1551 }
0x1124   :  { %v1554_v44 = vpop.xlane.xlu1 %1553 }
0x1126   :  { %v1556_v48 = vpop.xlane.xlu0 %1555 }
0x1128   :  { %v1558_v49 = vpop.xlane.xlu1 %1557 }
0x1179   :  { %v1628_v45 = vpop.f32.mrb[20].mxu1 }
0x117a   :  { %v1635_v46 = vrot.slane %v1628_v45, %v3796_v18  ;;  %v3355_v47 = vpop.f32.mrb[21].mxu1 }
0x117c   :  { %v1636_v50 = vadd.f32 %v1635_v46, %v1552_v43  ;;  %v1637_v51 = vadd.f32 %v1635_v46, %v1554_v44  ;;  %v1638_v52 = vadd.f32 %v1635_v46, %v1556_v48  ;;  %v1639_v53 = vadd.f32 %v1635_v46, %v1558_v49 }
0x117e   :  { %v1640_v54 = vmul.f32 0.2, %v1636_v50  ;;  %v1641_v55 = vmul.f32 0.2, %v1637_v51  ;;  %v1642_v58 = vmul.f32 0.2, %v1638_v52 }
0x117f   :  { %v1643_v59 = vmul.f32 0.2, %v1639_v53 }
0x1180   :  { %v1644_v60 = vmax.f32 %v1636_v50, %v1640_v54  ;;  %v1645_v61 = vmax.f32 %v1637_v51, %v1641_v55  ;;  %v1646_v0 = vmax.f32 %v1638_v52, %v1642_v58 }
0x1181   :  { %v1647_v1 = vmax.f32 %v1639_v53, %v1643_v59 }
0x1182   :  { %v1648_v2 = vadd.f32 %v1644_v60, %v3807_v56  ;;  %v1649_v3 = vadd.f32 %v1645_v61, %v3809_v57  ;;  %v1650_v6 = vadd.f32 %v1646_v0, %v3811_v62  ;;  %v3574_v0 = vld [vmem:[%s4215_s2 + $0x148] sm:$0xff]  }
0x1183   :  { %v1651_v7 = vadd.f32 %v1647_v1, %v3813_v63  ;;  %v3575_v1 = vld [vmem:[%s4215_s2 + $0x150] sm:$0xff]  }
0x1184   :  { %v1652_v4 = vsel %vm264_vm5, %v1648_v2, -inf  ;;  %v1655_v5 = vsel %vm264_vm5, %v1649_v3, -inf  ;;  %v1658_v8 = vsel %vm264_vm5, %v1650_v6, -inf }
0x1185   :  { %1653 = vmax.xlane.f32.xlu0 %v1652_v4  ;;  %1656 = vmax.xlane.f32.xlu1 %v1655_v5  ;;  %v1661_v9 = vsel %vm264_vm5, %v1651_v7, -inf  ;;  %v3578_v4 = vld [vmem:[%s4215_s2 + $0x168] sm:$0xff]   ;;  %v3579_v5 = vld [vmem:[%s4215_s2 + $0x170] sm:$0xff]  }
0x1189   :  { %1659 = vmax.xlane.f32.xlu0 %v1658_v8  ;;  %1662 = vmax.xlane.f32.xlu1 %v1661_v9 }
0x1212   :  { %v1654_v10 = vpop.xlane.xlu0 %1653  ;;  %v1657_v11 = vpop.xlane.xlu1 %1656 }
0x1213   :  { %v1664_v12 = vsub.f32 %v1648_v2, %v1654_v10  ;;  %v1665_v13 = vsub.f32 %v1649_v3, %v1657_v11  ;;  %v3576_v2 = vld [vmem:[%s4215_s2 + $0x158] sm:$0xff]   ;;  %v3577_v3 = vld [vmem:[%s4215_s2 + $0x160] sm:$0xff]  }
0x1215   :  { %v1668_v16 = vmul.f32 1.442695, %v1664_v12  ;;  %v1670_v17 = vmul.f32 1.442695, %v1665_v13  ;;  %v2948_v13 = vld [vmem:[%s4217_s3 + $0xa] sm:$0x3] }
0x1216   :  { %v1660_v19 = vpop.xlane.xlu0 %1659  ;;  %v1663_v20 = vpop.xlane.xlu1 %1662 }
0x1217   :  { %3661 = vpow2.f32 %v1668_v16  ;;  %v1666_v21 = vsub.f32 %v1650_v6, %v1660_v19  ;;  %v1667_v22 = vsub.f32 %v1651_v7, %v1663_v20  ;;  %v3580_v6 = vld [vmem:[%s4215_s2 + $0x178] sm:$0xff]   ;;  %v1888_v16 = vrot.slane %v2948_v13, %v3796_v18 }
0x1218   :  { %3663 = vpow2.f32 %v1670_v17 }
0x1219   :  { %v1672_v23 = vmul.f32 1.442695, %v1666_v21  ;;  %v1674_v24 = vmul.f32 1.442695, %v1667_v22 }
0x121b   :  { %3665 = vpow2.f32 %v1672_v23 }
0x121c   :  { %3667 = vpow2.f32 %v1674_v24 }
0x1221   :  { %v3662_v25 = vpop.eup %3661 }
0x1222   :  { %v3664_v26 = vpop.eup %3663  ;;  %v1676_v27 = vsel %vm264_vm5, %v3662_v25, 0.0 }
0x1223   :  { %1677 = vadd.xlane.f32.xlu0 %v1676_v27  ;;  %v1679_v28 = vsel %vm264_vm5, %v3664_v26, 0.0 }
0x1224   :  { %1680 = vadd.xlane.f32.xlu1 %v1679_v28  ;;  %v1902_v28 = vrot.slane %v2948_v13, 1 }
0x1225   :  { %v3666_v29 = vpop.eup %3665 }
0x1226   :  { %v3668_v30 = vpop.eup %3667  ;;  %v1682_v31 = vsel %vm264_vm5, %v3666_v29, 0.0 }
0x1227   :  { %1683 = vadd.xlane.f32.xlu0 %v1682_v31  ;;  %v1685_v32 = vsel %vm264_vm5, %v3668_v30, 0.0 }
0x1228   :  { %1686 = vadd.xlane.f32.xlu1 %v1685_v32 }
0x12b0   :  { %v1678_v34 = vpop.xlane.xlu0 %1677 }
0x12b1   :  { %3669 = vrcp.f32 %v1678_v34  ;;  %v1681_v35 = vpop.xlane.xlu1 %1680 }
0x12b2   :  { %3671 = vrcp.f32 %v1681_v35 }
0x12b4   :  { %v1684_v36 = vpop.xlane.xlu0 %1683 }
0x12b5   :  { %3673 = vrcp.f32 %v1684_v36  ;;  %v1687_v37 = vpop.xlane.xlu1 %1686 }
0x12b6   :  { %3675 = vrcp.f32 %v1687_v37 }
0x12bb   :  { %v3670_v38 = vpop.eup %3669 }
0x12bc   :  { %v3672_v39 = vpop.eup %3671  ;;  %v1692_v40 = vmul.f32 %v3670_v38, %v1678_v34 }
0x12bd   :  { %v1693_v41 = vmul.f32 %v3672_v39, %v1681_v35 }
0x12be   :  { %v1696_v42 = vsub.f32 2.0, %v1692_v40 }
0x12bf   :  { %v3674_v43 = vpop.eup %3673  ;;  %v1697_v44 = vsub.f32 2.0, %v1693_v41 }
0x12c0   :  { %v3676_v45 = vpop.eup %3675  ;;  %v1700_v46 = vmul.f32 %v3670_v38, %v1696_v42  ;;  %v1694_v47 = vmul.f32 %v3674_v43, %v1684_v36 }
0x12c1   :  { %v1701_v48 = vmul.f32 %v3672_v39, %v1697_v44  ;;  %v1695_v49 = vmul.f32 %v3676_v45, %v1687_v37 }
0x12c2   :  { %v1704_v50 = vmul.f32 %v3662_v25, %v1700_v46  ;;  %v1698_v51 = vsub.f32 2.0, %v1694_v47 }
0x12c3   :  { %v1705_v52 = vmul.f32 %v3664_v26, %v1701_v48  ;;  %v1699_v53 = vsub.f32 2.0, %v1695_v49 }
0x12c4   :  { %v1702_v54 = vmul.f32 %v3674_v43, %v1698_v51 }
0x12c5   :  { %v1703_v55 = vmul.f32 %v3676_v45, %v1699_v53  ;;  %v1708_v58 = vpack.c.bf16 %v1705_v52, %v1704_v50 }
0x12c6   :  { %v1706_v59 = vmul.f32 %v3666_v29, %v1702_v54 }
0x12c7   :  { %v1707_v60 = vmul.f32 %v3668_v30, %v1703_v55  ;;  %3360 = vmatprep.mubr.msk.bf16.mxu1 %vm264_vm5, %v1708_v58 }
0x12c9   :  { %v1709_v61 = vpack.c.bf16 %v1707_v60, %v1706_v59 }
0x12cb   :  { %3361 = vmatmul.mubr.msk.bf16.vlgmr.msra.gmra.mrb[24].mxu1 %vm264_vm5, %v1709_v61 }
0x12cc   :  { %3365 = vmatpush3.bf16.msra.mxu1 %v3573_v33 }
0x12cd   :  { %3366 = vmatprep.subr.bf16.mxu1 %v3574_v0 }
0x12d0   :  { %3367 = vmatpush3.bf16.msra.mxu1 %v3574_v0 }
0x12d1   :  { %3368 = vmatprep.subr.bf16.mxu1 %v3575_v1 }
0x12d4   :  { %3369 = vmatpush3.bf16.msra.mxu1 %v3575_v1 }
0x12d5   :  { %3370 = vmatprep.subr.bf16.mxu1 %v3576_v2 }
0x12d8   :  { %3371 = vmatpush3.bf16.msra.mxu1 %v3576_v2 }
0x12d9   :  { %3372 = vmatprep.subr.bf16.mxu1 %v3577_v3 }
0x12dc   :  { %3373 = vmatpush3.bf16.msra.mxu1 %v3577_v3 }
0x12dd   :  { %3374 = vmatprep.subr.bf16.mxu1 %v3578_v4 }
0x12e0   :  { %3375 = vmatpush3.bf16.msra.mxu1 %v3578_v4 }
0x12e1   :  { %3376 = vmatprep.subr.bf16.mxu1 %v3579_v5 }
0x12e4   :  { %3377 = vmatpush3.bf16.msra.mxu1 %v3579_v5 }
0x12e5   :  { %3378 = vmatprep.subr.bf16.mxu1 %v3580_v6 }
0x12e8   :  { %3379 = vmatpush3.bf16.msra.mxu1 %v3580_v6 }
0x12e9   :  { %3517 = vmatprep.subr.bf16.mxu1 %v3725_v14 }
0x139e   :  { %v3362_v7 = vpop.f32.mrb[24].mxu1 }
0x139f   :  { %v1752_v8 = vpop.f32.mrb[25].mxu1 }
0x13a0   :  { %v3363_v9 = vpop.f32.mrb[26].mxu1 }
0x13a1   :  { %v1787_v10 = vpack.c.bf16 %v3363_v9, %v3362_v7  ;;  %v1755_v11 = vpop.f32.mrb[27].mxu1 }
0x13a2   :  { %v1786_v12 = vpack.c.bf16 %v1755_v11, %v1752_v8 }
0x13a4   :  { %3380 = vmatprep.mubr.bf16.mxu1 %v1786_v12 }
0x13a5   :  { %3381 = vmatmul.mubr.bf16.vlgmr.msra.gmra.mrb[28].mxu1 %v1787_v10 }
0x13a6   :  { %3431 = vmatprep.mubr.msk.f32.mxu1 %vm3726_vm0, %v3727_v15 }
0x1478   :  { %v3382_v17 = vpop.f32.mrb[28].mxu1 }
0x1479   :  { %v1870_v19 = vpop.f32.mrb[29].mxu1  ;;  %v1891_v26 = vmul.f32 %v3382_v17, %v1888_v16 }
0x147a   :  { %v3383_v20 = vpop.f32.mrb[30].mxu1  ;;  %v1889_v21 = vmul.f32 %v1888_v16, %v1870_v19 }
0x147b   :  { %v3515_v22 = vpack.c.bf16 %v3383_v20, %v3382_v17  ;;  %v1873_v23 = vpop.f32.mrb[31].mxu1  ;;  %v1892_v27 = vmul.f32 %v3383_v20, %v1888_v16 }
0x147c   :  { %v3512_v24 = vpack.c.bf16 %v1873_v23, %v1870_v19  ;;  %1893 = vadd.xlane.f32.xlu0 %v1889_v21  ;;  %v1890_v25 = vmul.f32 %v1888_v16, %v1873_v23  ;;  %v3581_v19 = vld [vmem:[%s4215_s2 + $0x180] sm:$0xff]  }
0x147e   :  { %3513 = vmatpush3.bf16.xpose.msra.mxu0 %v3512_v24  ;;  %1895 = vadd.xlane.f32.xlu1 %v1890_v25 }
0x147f   :  { %3514 = vmatprep.subr.bf16.mxu0 %v3725_v14 }
0x1480   :  { %1897 = vadd.xlane.f32.xlu0 %v1891_v26 }
0x1482   :  { %1899 = vadd.xlane.f32.xlu1 %v1892_v27 }
0x1486   :  { %3516 = vmatpush3.bf16.xpose.msra.mxu0 %v3515_v22 }
0x1487   :  { %3395 = vmatprep.subr.bf16.mxu0 %v3512_v24 }
0x148d   :  { %3393 = vmatmul.mubr.f32.vlgmr.msra.gmra.mrb[24].mxu0 %v1902_v28 }
0x148e   :  { %3396 = vmatpush3.bf16.msra.mxu0 %v3512_v24 }
0x148f   :  { %3397 = vmatprep.subr.bf16.mxu0 %v3515_v22 }
0x1492   :  { %3398 = vmatpush3.bf16.msra.mxu0 %v3515_v22 }
0x1493   :  { %3403 = vmatprep.subr.bf16.mxu0 %v3581_v19 }
0x1509   :  { %v1894_v29 = vpop.xlane.xlu0 %1893 }
0x150b   :  { %v1896_v30 = vpop.xlane.xlu1 %1895 }
0x150d   :  { %v1898_v34 = vpop.xlane.xlu0 %1897 }
0x150f   :  { %v1900_v35 = vpop.xlane.xlu1 %1899 }
0x1560   :  { %v1970_v31 = vpop.f32.mrb[24].mxu0 }
0x1561   :  { %v1977_v32 = vrot.slane %v1970_v31, %v3796_v18  ;;  %v3394_v33 = vpop.f32.mrb[25].mxu0 }
0x1563   :  { %v1978_v36 = vadd.f32 %v1977_v32, %v1894_v29  ;;  %v1979_v37 = vadd.f32 %v1977_v32, %v1896_v30  ;;  %v1980_v38 = vadd.f32 %v1977_v32, %v1898_v34  ;;  %v1981_v39 = vadd.f32 %v1977_v32, %v1900_v35 }
0x1565   :  { %v1982_v40 = vmul.f32 0.2, %v1978_v36  ;;  %v1983_v41 = vmul.f32 0.2, %v1979_v37  ;;  %v1984_v42 = vmul.f32 0.2, %v1980_v38 }
0x1566   :  { %v1985_v43 = vmul.f32 0.2, %v1981_v39 }
0x1567   :  { %v1986_v44 = vmax.f32 %v1978_v36, %v1982_v40  ;;  %v1987_v45 = vmax.f32 %v1979_v37, %v1983_v41  ;;  %v1988_v46 = vmax.f32 %v1980_v38, %v1984_v42 }
0x1568   :  { %v1989_v47 = vmax.f32 %v1981_v39, %v1985_v43 }
0x1569   :  { %v1990_v48 = vadd.f32 %v1986_v44, %v3807_v56  ;;  %v1991_v49 = vadd.f32 %v1987_v45, %v3809_v57  ;;  %v1992_v52 = vadd.f32 %v1988_v46, %v3811_v62  ;;  %v3582_v46 = vld [vmem:[%s4215_s2 + $0x188] sm:$0xff]  }
0x156a   :  { %v1993_v53 = vadd.f32 %v1989_v47, %v3813_v63  ;;  %v3583_v47 = vld [vmem:[%s4215_s2 + $0x190] sm:$0xff]  }
0x156b   :  { %v1994_v50 = vsel %vm264_vm5, %v1990_v48, -inf  ;;  %v1997_v51 = vsel %vm264_vm5, %v1991_v49, -inf  ;;  %v2000_v54 = vsel %vm264_vm5, %v1992_v52, -inf }
0x156c   :  { %1995 = vmax.xlane.f32.xlu0 %v1994_v50  ;;  %1998 = vmax.xlane.f32.xlu1 %v1997_v51  ;;  %v2003_v55 = vsel %vm264_vm5, %v1993_v53, -inf  ;;  %v3586_v50 = vld [vmem:[%s4215_s2 + $0x1a8] sm:$0xff]   ;;  %v3587_v51 = vld [vmem:[%s4215_s2 + $0x1b0] sm:$0xff]  }
0x1570   :  { %2001 = vmax.xlane.f32.xlu0 %v2000_v54  ;;  %2004 = vmax.xlane.f32.xlu1 %v2003_v55 }
0x15f9   :  { %v1996_v58 = vpop.xlane.xlu0 %1995  ;;  %v1999_v59 = vpop.xlane.xlu1 %1998 }
0x15fa   :  { %v2006_v60 = vsub.f32 %v1990_v48, %v1996_v58  ;;  %v2007_v61 = vsub.f32 %v1991_v49, %v1999_v59  ;;  %v3584_v48 = vld [vmem:[%s4215_s2 + $0x198] sm:$0xff]   ;;  %v3585_v49 = vld [vmem:[%s4215_s2 + $0x1a0] sm:$0xff]  }
0x15fc   :  { %v2010_v0 = vmul.f32 1.442695, %v2006_v60  ;;  %v2012_v1 = vmul.f32 1.442695, %v2007_v61  ;;  %v2975_v61 = vld [vmem:[%s4217_s3 + $0xc] sm:$0x3] }
0x15fd   :  { %v2002_v2 = vpop.xlane.xlu0 %2001  ;;  %v2005_v3 = vpop.xlane.xlu1 %2004 }
0x15fe   :  { %3677 = vpow2.f32 %v2010_v0  ;;  %v2008_v4 = vsub.f32 %v1992_v52, %v2002_v2  ;;  %v2009_v5 = vsub.f32 %v1993_v53, %v2005_v3  ;;  %v3588_v52 = vld [vmem:[%s4215_s2 + $0x1b8] sm:$0xff]   ;;  %v2230_v0 = vrot.slane %v2975_v61, %v3796_v18 }
0x15ff   :  { %3679 = vpow2.f32 %v2012_v1 }
0x1600   :  { %v2014_v6 = vmul.f32 1.442695, %v2008_v4  ;;  %v2016_v7 = vmul.f32 1.442695, %v2009_v5 }
0x1602   :  { %3681 = vpow2.f32 %v2014_v6 }
0x1603   :  { %3683 = vpow2.f32 %v2016_v7 }
0x1608   :  { %v3678_v8 = vpop.eup %3677 }
0x1609   :  { %v3680_v9 = vpop.eup %3679  ;;  %v2018_v10 = vsel %vm264_vm5, %v3678_v8, 0.0 }
0x160a   :  { %2019 = vadd.xlane.f32.xlu0 %v2018_v10  ;;  %v2021_v11 = vsel %vm264_vm5, %v3680_v9, 0.0  ;;  %v2244_v10 = vrot.slane %v2975_v61, 1 }
0x160b   :  { %2022 = vadd.xlane.f32.xlu1 %v2021_v11 }
0x160c   :  { %v3682_v12 = vpop.eup %3681 }
0x160d   :  { %v3684_v13 = vpop.eup %3683  ;;  %v2024_v16 = vsel %vm264_vm5, %v3682_v12, 0.0 }
0x160e   :  { %2025 = vadd.xlane.f32.xlu0 %v2024_v16  ;;  %v2027_v17 = vsel %vm264_vm5, %v3684_v13, 0.0 }
0x160f   :  { %2028 = vadd.xlane.f32.xlu1 %v2027_v17 }
0x1697   :  { %v2020_v20 = vpop.xlane.xlu0 %2019 }
0x1698   :  { %3685 = vrcp.f32 %v2020_v20  ;;  %v2023_v21 = vpop.xlane.xlu1 %2022 }
0x1699   :  { %3687 = vrcp.f32 %v2023_v21 }
0x169b   :  { %v2026_v22 = vpop.xlane.xlu0 %2025 }
0x169c   :  { %3689 = vrcp.f32 %v2026_v22  ;;  %v2029_v23 = vpop.xlane.xlu1 %2028 }
0x169d   :  { %3691 = vrcp.f32 %v2029_v23 }
0x16a2   :  { %v3686_v24 = vpop.eup %3685 }
0x16a3   :  { %v3688_v25 = vpop.eup %3687  ;;  %v2034_v26 = vmul.f32 %v3686_v24, %v2020_v20 }
0x16a4   :  { %v2035_v27 = vmul.f32 %v3688_v25, %v2023_v21 }
0x16a5   :  { %v2038_v28 = vsub.f32 2.0, %v2034_v26 }
0x16a6   :  { %v3690_v29 = vpop.eup %3689  ;;  %v2039_v30 = vsub.f32 2.0, %v2035_v27 }
0x16a7   :  { %v3692_v31 = vpop.eup %3691  ;;  %v2042_v32 = vmul.f32 %v3686_v24, %v2038_v28  ;;  %v2036_v33 = vmul.f32 %v3690_v29, %v2026_v22 }
0x16a8   :  { %v2043_v34 = vmul.f32 %v3688_v25, %v2039_v30  ;;  %v2037_v35 = vmul.f32 %v3692_v31, %v2029_v23 }
0x16a9   :  { %v2046_v36 = vmul.f32 %v3678_v8, %v2042_v32  ;;  %v2040_v37 = vsub.f32 2.0, %v2036_v33 }
0x16aa   :  { %v2047_v38 = vmul.f32 %v3680_v9, %v2043_v34  ;;  %v2041_v39 = vsub.f32 2.0, %v2037_v35 }
0x16ab   :  { %v2044_v40 = vmul.f32 %v3690_v29, %v2040_v37 }
0x16ac   :  { %v2045_v41 = vmul.f32 %v3692_v31, %v2041_v39  ;;  %v2050_v42 = vpack.c.bf16 %v2047_v38, %v2046_v36 }
0x16ad   :  { %v2048_v43 = vmul.f32 %v3682_v12, %v2044_v40 }
0x16ae   :  { %v2049_v44 = vmul.f32 %v3684_v13, %v2045_v41  ;;  %3399 = vmatprep.mubr.msk.bf16.mxu0 %vm264_vm5, %v2050_v42 }
0x16b0   :  { %v2051_v45 = vpack.c.bf16 %v2049_v44, %v2048_v43 }
0x16b2   :  { %3400 = vmatmul.mubr.msk.bf16.vlgmr.msra.gmra.mrb[28].mxu0 %vm264_vm5, %v2051_v45 }
0x16b3   :  { %3404 = vmatpush3.bf16.msra.mxu0 %v3581_v19 }
0x16b4   :  { %3405 = vmatprep.subr.bf16.mxu0 %v3582_v46 }
0x16b7   :  { %3406 = vmatpush3.bf16.msra.mxu0 %v3582_v46 }
0x16b8   :  { %3407 = vmatprep.subr.bf16.mxu0 %v3583_v47 }
0x16bb   :  { %3408 = vmatpush3.bf16.msra.mxu0 %v3583_v47 }
0x16bc   :  { %3409 = vmatprep.subr.bf16.mxu0 %v3584_v48 }
0x16bf   :  { %3410 = vmatpush3.bf16.msra.mxu0 %v3584_v48 }
0x16c0   :  { %3411 = vmatprep.subr.bf16.mxu0 %v3585_v49 }
0x16c3   :  { %3412 = vmatpush3.bf16.msra.mxu0 %v3585_v49 }
0x16c4   :  { %3413 = vmatprep.subr.bf16.mxu0 %v3586_v50 }
0x16c7   :  { %3414 = vmatpush3.bf16.msra.mxu0 %v3586_v50 }
0x16c8   :  { %3415 = vmatprep.subr.bf16.mxu0 %v3587_v51 }
0x16cb   :  { %3416 = vmatpush3.bf16.msra.mxu0 %v3587_v51 }
0x16cc   :  { %3417 = vmatprep.subr.bf16.mxu0 %v3588_v52 }
0x16cf   :  { %3418 = vmatpush3.bf16.msra.mxu0 %v3588_v52 }
0x16d0   :  { %3523 = vmatprep.subr.bf16.mxu0 %v3725_v14 }
0x1785   :  { %v3401_v53 = vpop.f32.mrb[28].mxu0 }
0x1786   :  { %v2094_v54 = vpop.f32.mrb[29].mxu0 }
0x1787   :  { %v3402_v55 = vpop.f32.mrb[30].mxu0 }
0x1788   :  { %v2129_v58 = vpack.c.bf16 %v3402_v55, %v3401_v53  ;;  %v2097_v59 = vpop.f32.mrb[31].mxu0 }
0x1789   :  { %v2128_v60 = vpack.c.bf16 %v2097_v59, %v2094_v54 }
0x178b   :  { %3419 = vmatprep.mubr.bf16.mxu0 %v2128_v60 }
0x178c   :  { %3420 = vmatmul.mubr.bf16.vlgmr.msra.gmra.mrb[32].mxu0 %v2129_v58 }
0x178d   :  { %3470 = vmatprep.mubr.msk.f32.mxu0 %vm3726_vm0, %v3727_v15 }
0x185f   :  { %v3421_v1 = vpop.f32.mrb[32].mxu0 }
0x1860   :  { %v2212_v2 = vpop.f32.mrb[33].mxu0  ;;  %v2233_v9 = vmul.f32 %v3421_v1, %v2230_v0 }
0x1861   :  { %v3422_v3 = vpop.f32.mrb[34].mxu0  ;;  %v2231_v4 = vmul.f32 %v2230_v0, %v2212_v2 }
0x1862   :  { %v3521_v5 = vpack.c.bf16 %v3422_v3, %v3421_v1  ;;  %v2215_v6 = vpop.f32.mrb[35].mxu0  ;;  %v2234_v15 = vmul.f32 %v3422_v3, %v2230_v0  ;;  %v3589_v1 = vld [vmem:[%s4215_s2 + $0x1c0] sm:$0xff]  }
0x1863   :  { %v3518_v7 = vpack.c.bf16 %v2215_v6, %v2212_v2  ;;  %2235 = vadd.xlane.f32.xlu0 %v2231_v4  ;;  %v2232_v8 = vmul.f32 %v2230_v0, %v2215_v6 }
0x1865   :  { %3519 = vmatpush3.bf16.xpose.msra.mxu1 %v3518_v7  ;;  %2237 = vadd.xlane.f32.xlu1 %v2232_v8 }
0x1866   :  { %3520 = vmatprep.subr.bf16.mxu1 %v3725_v14 }
0x1867   :  { %2239 = vadd.xlane.f32.xlu0 %v2233_v9 }
0x1869   :  { %2241 = vadd.xlane.f32.xlu1 %v2234_v15 }
0x186d   :  { %3522 = vmatpush3.bf16.xpose.msra.mxu1 %v3521_v5 }
0x186e   :  { %3434 = vmatprep.subr.bf16.mxu1 %v3518_v7 }
0x1874   :  { %3432 = vmatmul.mubr.f32.vlgmr.msra.gmra.mrb[22].mxu1 %v2244_v10 }
0x1875   :  { %3435 = vmatpush3.bf16.msra.mxu1 %v3518_v7 }
0x1876   :  { %3436 = vmatprep.subr.bf16.mxu1 %v3521_v5 }
0x1879   :  { %3437 = vmatpush3.bf16.msra.mxu1 %v3521_v5 }
0x187a   :  { %3442 = vmatprep.subr.bf16.mxu1 %v3589_v1 }
0x18f0   :  { %v2236_v11 = vpop.xlane.xlu0 %2235 }
0x18f2   :  { %v2238_v12 = vpop.xlane.xlu1 %2237 }
0x18f4   :  { %v2240_v19 = vpop.xlane.xlu0 %2239 }
0x18f6   :  { %v2242_v20 = vpop.xlane.xlu1 %2241 }
0x1947   :  { %v2312_v13 = vpop.f32.mrb[22].mxu1 }
0x1948   :  { %v2319_v16 = vrot.slane %v2312_v13, %v3796_v18  ;;  %v3433_v17 = vpop.f32.mrb[23].mxu1 }
0x194a   :  { %v2320_v21 = vadd.f32 %v2319_v16, %v2236_v11  ;;  %v2321_v22 = vadd.f32 %v2319_v16, %v2238_v12  ;;  %v2322_v23 = vadd.f32 %v2319_v16, %v2240_v19  ;;  %v2323_v24 = vadd.f32 %v2319_v16, %v2242_v20 }
0x194c   :  { %v2324_v25 = vmul.f32 0.2, %v2320_v21  ;;  %v2325_v26 = vmul.f32 0.2, %v2321_v22  ;;  %v2326_v27 = vmul.f32 0.2, %v2322_v23 }
0x194d   :  { %v2327_v28 = vmul.f32 0.2, %v2323_v24 }
0x194e   :  { %v2328_v29 = vmax.f32 %v2320_v21, %v2324_v25  ;;  %v2329_v30 = vmax.f32 %v2321_v22, %v2325_v26  ;;  %v2330_v31 = vmax.f32 %v2322_v23, %v2326_v27 }
0x194f   :  { %v2331_v32 = vmax.f32 %v2323_v24, %v2327_v28 }
0x1950   :  { %v2332_v33 = vadd.f32 %v2328_v29, %v3807_v56  ;;  %v2333_v34 = vadd.f32 %v2329_v30, %v3809_v57  ;;  %v2334_v37 = vadd.f32 %v2330_v31, %v3811_v62  ;;  %v3590_v30 = vld [vmem:[%s4215_s2 + $0x1c8] sm:$0xff]   ;;  %v3591_v31 = vld [vmem:[%s4215_s2 + $0x1d0] sm:$0xff]  }
0x1951   :  { %v2335_v38 = vadd.f32 %v2331_v32, %v3813_v63  ;;  %v3592_v32 = vld [vmem:[%s4215_s2 + $0x1d8] sm:$0xff]  }
0x1952   :  { %v2336_v35 = vsel %vm264_vm5, %v2332_v33, -inf  ;;  %v2339_v36 = vsel %vm264_vm5, %v2333_v34, -inf  ;;  %v2342_v39 = vsel %vm264_vm5, %v2334_v37, -inf }
0x1953   :  { %2337 = vmax.xlane.f32.xlu0 %v2336_v35  ;;  %2340 = vmax.xlane.f32.xlu1 %v2339_v36  ;;  %v2345_v40 = vsel %vm264_vm5, %v2335_v38, -inf  ;;  %v3595_v35 = vld [vmem:[%s4215_s2 + $0x1f0] sm:$0xff]   ;;  %v3596_v36 = vld [vmem:[%s4215_s2 + $0x1f8] sm:$0xff]  }
0x1957   :  { %2343 = vmax.xlane.f32.xlu0 %v2342_v39  ;;  %2346 = vmax.xlane.f32.xlu1 %v2345_v40 }
0x19e0   :  { %v2338_v41 = vpop.xlane.xlu0 %2337  ;;  %v2341_v42 = vpop.xlane.xlu1 %2340 }
0x19e1   :  { %v2348_v43 = vsub.f32 %v2332_v33, %v2338_v41  ;;  %v2349_v44 = vsub.f32 %v2333_v34, %v2341_v42  ;;  %v3593_v33 = vld [vmem:[%s4215_s2 + $0x1e0] sm:$0xff]   ;;  %v3594_v34 = vld [vmem:[%s4215_s2 + $0x1e8] sm:$0xff]  }
0x19e3   :  { %v2352_v45 = vmul.f32 1.442695, %v2348_v43  ;;  %v2354_v46 = vmul.f32 1.442695, %v2349_v44  ;;  %v3002_v43 = vld [vmem:[%s4217_s3 + $0xe] sm:$0x3] }
0x19e4   :  { %v2344_v47 = vpop.xlane.xlu0 %2343  ;;  %v2347_v48 = vpop.xlane.xlu1 %2346  ;;  %v2572_v44 = vrot.slane %v3002_v43, %v3796_v18 }
0x19e5   :  { %3693 = vpow2.f32 %v2352_v45  ;;  %v2350_v49 = vsub.f32 %v2334_v37, %v2344_v47  ;;  %v2351_v50 = vsub.f32 %v2335_v38, %v2347_v48 }
0x19e6   :  { %3695 = vpow2.f32 %v2354_v46 }
0x19e7   :  { %v2356_v51 = vmul.f32 1.442695, %v2350_v49  ;;  %v2358_v52 = vmul.f32 1.442695, %v2351_v50 }
0x19e9   :  { %3697 = vpow2.f32 %v2356_v51 }
0x19ea   :  { %3699 = vpow2.f32 %v2358_v52 }
0x19ef   :  { %v3694_v53 = vpop.eup %3693 }
0x19f0   :  { %v3696_v54 = vpop.eup %3695  ;;  %v2360_v55 = vsel %vm264_vm5, %v3694_v53, 0.0 }
0x19f1   :  { %2361 = vadd.xlane.f32.xlu0 %v2360_v55  ;;  %v2363_v58 = vsel %vm264_vm5, %v3696_v54, 0.0  ;;  %v2586_v55 = vrot.slane %v3002_v43, 1 }
0x19f2   :  { %2364 = vadd.xlane.f32.xlu1 %v2363_v58 }
0x19f3   :  { %v3698_v59 = vpop.eup %3697 }
0x19f4   :  { %v3700_v60 = vpop.eup %3699  ;;  %v2366_v61 = vsel %vm264_vm5, %v3698_v59, 0.0 }
0x19f5   :  { %2367 = vadd.xlane.f32.xlu0 %v2366_v61  ;;  %v2369_v0 = vsel %vm264_vm5, %v3700_v60, 0.0 }
0x19f6   :  { %2370 = vadd.xlane.f32.xlu1 %v2369_v0 }
0x1a7e   :  { %v2362_v2 = vpop.xlane.xlu0 %2361 }
0x1a7f   :  { %3701 = vrcp.f32 %v2362_v2  ;;  %v2365_v3 = vpop.xlane.xlu1 %2364 }
0x1a80   :  { %3703 = vrcp.f32 %v2365_v3 }
0x1a82   :  { %v2368_v4 = vpop.xlane.xlu0 %2367 }
0x1a83   :  { %3705 = vrcp.f32 %v2368_v4  ;;  %v2371_v5 = vpop.xlane.xlu1 %2370 }
0x1a84   :  { %3707 = vrcp.f32 %v2371_v5 }
0x1a89   :  { %v3702_v6 = vpop.eup %3701 }
0x1a8a   :  { %v3704_v7 = vpop.eup %3703  ;;  %v2376_v8 = vmul.f32 %v3702_v6, %v2362_v2 }
0x1a8b   :  { %v2377_v9 = vmul.f32 %v3704_v7, %v2365_v3 }
0x1a8c   :  { %v2380_v15 = vsub.f32 2.0, %v2376_v8 }
0x1a8d   :  { %v3706_v10 = vpop.eup %3705  ;;  %v2381_v11 = vsub.f32 2.0, %v2377_v9 }
0x1a8e   :  { %v3708_v12 = vpop.eup %3707  ;;  %v2384_v13 = vmul.f32 %v3702_v6, %v2380_v15  ;;  %v2378_v16 = vmul.f32 %v3706_v10, %v2368_v4 }
0x1a8f   :  { %v2385_v17 = vmul.f32 %v3704_v7, %v2381_v11  ;;  %v2379_v19 = vmul.f32 %v3708_v12, %v2371_v5 }
0x1a90   :  { %v2388_v20 = vmul.f32 %v3694_v53, %v2384_v13  ;;  %v2382_v21 = vsub.f32 2.0, %v2378_v16 }
0x1a91   :  { %v2389_v22 = vmul.f32 %v3696_v54, %v2385_v17  ;;  %v2383_v23 = vsub.f32 2.0, %v2379_v19 }
0x1a92   :  { %v2386_v24 = vmul.f32 %v3706_v10, %v2382_v21 }
0x1a93   :  { %v2387_v25 = vmul.f32 %v3708_v12, %v2383_v23  ;;  %v2392_v26 = vpack.c.bf16 %v2389_v22, %v2388_v20 }
0x1a94   :  { %v2390_v27 = vmul.f32 %v3698_v59, %v2386_v24 }
0x1a95   :  { %v2391_v28 = vmul.f32 %v3700_v60, %v2387_v25  ;;  %3438 = vmatprep.mubr.msk.bf16.mxu1 %vm264_vm5, %v2392_v26 }
0x1a97   :  { %v2393_v29 = vpack.c.bf16 %v2391_v28, %v2390_v27 }
0x1a99   :  { %3439 = vmatmul.mubr.msk.bf16.vlgmr.msra.gmra.mrb[32].mxu1 %vm264_vm5, %v2393_v29 }
0x1a9a   :  { %3443 = vmatpush3.bf16.msra.mxu1 %v3589_v1 }
0x1a9b   :  { %3444 = vmatprep.subr.bf16.mxu1 %v3590_v30 }
0x1a9e   :  { %3445 = vmatpush3.bf16.msra.mxu1 %v3590_v30 }
0x1a9f   :  { %3446 = vmatprep.subr.bf16.mxu1 %v3591_v31 }
0x1aa2   :  { %3447 = vmatpush3.bf16.msra.mxu1 %v3591_v31 }
0x1aa3   :  { %3448 = vmatprep.subr.bf16.mxu1 %v3592_v32 }
0x1aa6   :  { %3449 = vmatpush3.bf16.msra.mxu1 %v3592_v32 }
0x1aa7   :  { %3450 = vmatprep.subr.bf16.mxu1 %v3593_v33 }
0x1aaa   :  { %3451 = vmatpush3.bf16.msra.mxu1 %v3593_v33 }
0x1aab   :  { %3452 = vmatprep.subr.bf16.mxu1 %v3594_v34 }
0x1aae   :  { %3453 = vmatpush3.bf16.msra.mxu1 %v3594_v34 }
0x1aaf   :  { %3454 = vmatprep.subr.bf16.mxu1 %v3595_v35 }
0x1ab2   :  { %3455 = vmatpush3.bf16.msra.mxu1 %v3595_v35 }
0x1ab3   :  { %3456 = vmatprep.subr.bf16.mxu1 %v3596_v36 }
0x1ab6   :  { %3457 = vmatpush3.bf16.msra.mxu1 %v3596_v36 }
0x1b6c   :  { %v3440_v37 = vpop.f32.mrb[32].mxu1 }
0x1b6d   :  { %v2436_v38 = vpop.f32.mrb[33].mxu1 }
0x1b6e   :  { %v3441_v39 = vpop.f32.mrb[34].mxu1 }
0x1b6f   :  { %v2471_v40 = vpack.c.bf16 %v3441_v39, %v3440_v37  ;;  %v2439_v41 = vpop.f32.mrb[35].mxu1 }
0x1b70   :  { %v2470_v42 = vpack.c.bf16 %v2439_v41, %v2436_v38 }
0x1b72   :  { %3458 = vmatprep.mubr.bf16.mxu1 %v2470_v42 }
0x1b73   :  { %3459 = vmatmul.mubr.bf16.vlgmr.msra.gmra.mrb[36].mxu1 %v2471_v40 }
0x1c46   :  { %v3460_v45 = vpop.f32.mrb[36].mxu1 }
0x1c47   :  { %v2554_v46 = vpop.f32.mrb[37].mxu1  ;;  %v2575_v53 = vmul.f32 %v3460_v45, %v2572_v44 }
0x1c48   :  { %v3461_v47 = vpop.f32.mrb[38].mxu1  ;;  %v2573_v48 = vmul.f32 %v2572_v44, %v2554_v46 }
0x1c49   :  { %v3527_v49 = vpack.c.bf16 %v3461_v47, %v3460_v45  ;;  %v2557_v50 = vpop.f32.mrb[39].mxu1  ;;  %v2576_v54 = vmul.f32 %v3461_v47, %v2572_v44 }
0x1c4a   :  { %v2574_v51 = vmul.f32 %v2572_v44, %v2557_v50  ;;  %v3524_v52 = vpack.c.bf16 %v2557_v50, %v2554_v46  ;;  %2577 = vadd.xlane.f32.xlu0 %v2573_v48 }
0x1c4c   :  { %3525 = vmatpush3.bf16.xpose.msra.mxu0 %v3524_v52  ;;  %2579 = vadd.xlane.f32.xlu1 %v2574_v51 }
0x1c4d   :  { %3526 = vmatprep.subr.bf16.mxu0 %v3725_v14 }
0x1c4e   :  { %2581 = vadd.xlane.f32.xlu0 %v2575_v53 }
0x1c50   :  { %2583 = vadd.xlane.f32.xlu1 %v2576_v54 }
0x1c54   :  { %3528 = vmatpush3.bf16.xpose.msra.mxu0 %v3527_v49 }
0x1c55   :  { %3473 = vmatprep.subr.bf16.mxu0 %v3524_v52 }
0x1c5b   :  { %3471 = vmatmul.mubr.f32.vlgmr.msra.gmra.mrb[26].mxu0 %v2586_v55 }
0x1c5c   :  { %3474 = vmatpush3.bf16.msra.mxu0 %v3524_v52 }
0x1c5d   :  { %3475 = vmatprep.subr.bf16.mxu0 %v3527_v49 }
0x1c60   :  { %3476 = vmatpush3.bf16.msra.mxu0 %v3527_v49 }
0x1cd7   :  { %v2578_v58 = vpop.xlane.xlu0 %2577 }
0x1cd9   :  { %v2580_v59 = vpop.xlane.xlu1 %2579 }
0x1cdb   :  { %v2582_v1 = vpop.xlane.xlu0 %2581 }
0x1cdd   :  { %v2584_v2 = vpop.xlane.xlu1 %2583 }
0x1d2e   :  { %v2654_v60 = vpop.f32.mrb[26].mxu0 }
0x1d2f   :  { %v2661_v61 = vrot.slane %v2654_v60, %v3796_v18  ;;  %v3472_v0 = vpop.f32.mrb[27].mxu0 }
0x1d31   :  { %v2662_v3 = vadd.f32 %v2661_v61, %v2578_v58  ;;  %v2663_v14 = vadd.f32 %v2661_v61, %v2580_v59  ;;  %v2664_v4 = vadd.f32 %v2661_v61, %v2582_v1  ;;  %v2665_v5 = vadd.f32 %v2661_v61, %v2584_v2 }
0x1d33   :  { %v2666_v6 = vmul.f32 0.2, %v2662_v3  ;;  %v2667_v7 = vmul.f32 0.2, %v2663_v14  ;;  %v2668_v8 = vmul.f32 0.2, %v2664_v4 }
0x1d34   :  { %v2669_v9 = vmul.f32 0.2, %v2665_v5 }
0x1d35   :  { %v2670_v15 = vmax.f32 %v2662_v3, %v2666_v6  ;;  %v2671_v10 = vmax.f32 %v2663_v14, %v2667_v7  ;;  %v2672_v11 = vmax.f32 %v2664_v4, %v2668_v8 }
0x1d36   :  { %v2673_v12 = vmax.f32 %v2665_v5, %v2669_v9 }
0x1d37   :  { %v2674_v13 = vadd.f32 %v2670_v15, %v3807_v56  ;;  %v2675_v16 = vadd.f32 %v2671_v10, %v3809_v57  ;;  %v2676_v19 = vadd.f32 %v2672_v11, %v3811_v62 }
0x1d38   :  { %v2677_v20 = vadd.f32 %v2673_v12, %v3813_v63 }
0x1d39   :  { %v2678_v18 = vsel %vm264_vm5, %v2674_v13, -inf  ;;  %v2681_v17 = vsel %vm264_vm5, %v2675_v16, -inf  ;;  %v2684_v21 = vsel %vm264_vm5, %v2676_v19, -inf }
0x1d3a   :  { %2679 = vmax.xlane.f32.xlu0 %v2678_v18  ;;  %2682 = vmax.xlane.f32.xlu1 %v2681_v17  ;;  %v2687_v22 = vsel %vm264_vm5, %v2677_v20, -inf }
0x1d3e   :  { %2685 = vmax.xlane.f32.xlu0 %v2684_v21  ;;  %2688 = vmax.xlane.f32.xlu1 %v2687_v22 }
0x1dc7   :  { %v2680_v23 = vpop.xlane.xlu0 %2679  ;;  %v2683_v56 = vpop.xlane.xlu1 %2682 }
0x1dc8   :  { %v2690_v24 = vsub.f32 %v2674_v13, %v2680_v23  ;;  %v2691_v57 = vsub.f32 %v2675_v16, %v2683_v56 }
0x1dca   :  { %v2694_v25 = vmul.f32 1.442695, %v2690_v24  ;;  %v2696_v26 = vmul.f32 1.442695, %v2691_v57 }
0x1dcb   :  { %v2686_v27 = vpop.xlane.xlu0 %2685  ;;  %v2689_v28 = vpop.xlane.xlu1 %2688 }
0x1dcc   :  { %3709 = vpow2.f32 %v2694_v25  ;;  %v2692_v62 = vsub.f32 %v2676_v19, %v2686_v27  ;;  %v2693_v29 = vsub.f32 %v2677_v20, %v2689_v28 }
0x1dcd   :  { %3711 = vpow2.f32 %v2696_v26 }
0x1dce   :  { %v2698_v63 = vmul.f32 1.442695, %v2692_v62  ;;  %v2700_v30 = vmul.f32 1.442695, %v2693_v29 }
0x1dd0   :  { %3713 = vpow2.f32 %v2698_v63 }
0x1dd1   :  { %3715 = vpow2.f32 %v2700_v30 }
0x1dd6   :  { %v3710_v31 = vpop.eup %3709 }
0x1dd7   :  { %v3712_v32 = vpop.eup %3711  ;;  %v2702_v33 = vsel %vm264_vm5, %v3710_v31, 0.0 }
0x1dd8   :  { %2703 = vadd.xlane.f32.xlu0 %v2702_v33  ;;  %v2705_v34 = vsel %vm264_vm5, %v3712_v32, 0.0 }
0x1dd9   :  { %2706 = vadd.xlane.f32.xlu1 %v2705_v34 }
0x1dda   :  { %v3714_v35 = vpop.eup %3713 }
0x1ddb   :  { %v3716_v36 = vpop.eup %3715  ;;  %v2708_v37 = vsel %vm264_vm5, %v3714_v35, 0.0 }
0x1ddc   :  { %2709 = vadd.xlane.f32.xlu0 %v2708_v37  ;;  %v2711_v38 = vsel %vm264_vm5, %v3716_v36, 0.0 }
0x1ddd   :  { %2712 = vadd.xlane.f32.xlu1 %v2711_v38 }
0x1e65   :  { %v2704_v39 = vpop.xlane.xlu0 %2703 }
0x1e66   :  { %3717 = vrcp.f32 %v2704_v39  ;;  %v2707_v40 = vpop.xlane.xlu1 %2706 }
0x1e67   :  { %3719 = vrcp.f32 %v2707_v40 }
0x1e69   :  { %v2710_v41 = vpop.xlane.xlu0 %2709 }
0x1e6a   :  { %3721 = vrcp.f32 %v2710_v41  ;;  %v2713_v42 = vpop.xlane.xlu1 %2712 }
0x1e6b   :  { %3723 = vrcp.f32 %v2713_v42 }
0x1e70   :  { %v3718_v43 = vpop.eup %3717 }
0x1e71   :  { %v3720_v44 = vpop.eup %3719  ;;  %v2718_v45 = vmul.f32 %v3718_v43, %v2704_v39 }
0x1e72   :  { %v2719_v46 = vmul.f32 %v3720_v44, %v2707_v40 }
0x1e73   :  { %v2722_v47 = vsub.f32 2.0, %v2718_v45 }
0x1e74   :  { %v3722_v48 = vpop.eup %3721  ;;  %v2723_v49 = vsub.f32 2.0, %v2719_v46 }
0x1e75   :  { %v3724_v50 = vpop.eup %3723  ;;  %v2726_v51 = vmul.f32 %v3718_v43, %v2722_v47  ;;  %v2720_v52 = vmul.f32 %v3722_v48, %v2710_v41 }
0x1e76   :  { %v2727_v53 = vmul.f32 %v3720_v44, %v2723_v49  ;;  %v2721_v54 = vmul.f32 %v3724_v50, %v2713_v42 }
0x1e77   :  { %v2730_v55 = vmul.f32 %v3710_v31, %v2726_v51  ;;  %v2724_v58 = vsub.f32 2.0, %v2720_v52 }
0x1e78   :  { %v2731_v59 = vmul.f32 %v3712_v32, %v2727_v53  ;;  %v2725_v60 = vsub.f32 2.0, %v2721_v54 }
0x1e79   :  { %v2728_v61 = vmul.f32 %v3722_v48, %v2724_v58 }
0x1e7a   :  { %v2729_v0 = vmul.f32 %v3724_v50, %v2725_v60  ;;  %v2734_v1 = vpack.c.bf16 %v2731_v59, %v2730_v55 }
0x1e7b   :  { %v2732_v2 = vmul.f32 %v3714_v35, %v2728_v61 }
0x1e7c   :  { %v2733_v3 = vmul.f32 %v3716_v36, %v2729_v0  ;;  %3477 = vmatprep.mubr.msk.bf16.mxu0 %vm264_vm5, %v2734_v1 }
0x1e7e   :  { %v2735_v14 = vpack.c.bf16 %v2733_v3, %v2732_v2 }
0x1e80   :  { %3478 = vmatmul.mubr.msk.bf16.vlgmr.msra.gmra.mrb[36].mxu0 %vm264_vm5, %v2735_v14 }
0x1f53   :  { %v3479_v4 = vpop.f32.mrb[36].mxu0 }
0x1f54   :  { %3015 = vst [vmem:[%s4219_s4 + $0x90] sm:$0xff] %v3479_v4  ;;  %v2778_v5 = vpop.f32.mrb[37].mxu0 }
0x1f55   :  { %3013 = vst [vmem:[%s4219_s4 + $0x80] sm:$0xff] %v2778_v5  ;;  %v3480_v6 = vpop.f32.mrb[38].mxu0 }
0x1f56   :  { %3016 = vst [vmem:[%s4219_s4 + $0x98] sm:$0xff] %v3480_v6  ;;  %v2781_v7 = vpop.f32.mrb[39].mxu0 }
0x1f57   :  { %3014 = vst [vmem:[%s4219_s4 + $0x88] sm:$0xff] %v2781_v7 }

</bundles_post_ra>
